<compile_context>
chip_gen: v5e
topology: v5e:2x2
jax: 0.10.0
libtpu: 0.0.40
codegen_flags: <defaults>
</compile_context>

<pallas_src>
import functools

import jax
import jax.numpy as jnp
from jax.experimental import pallas as pl
from jax.experimental.pallas import tpu as pltpu


# ----------------------------- hardware helpers -------------------------------


@functools.lru_cache(maxsize=None)
def _vmem_limit_bytes() -> int:
    """~3/4 of physical VMEM (≈48 MiB on v7x, ≈96 MiB on v5e/v6e)."""
    try:
        cap = getattr(pltpu.get_tpu_info(), "vmem_capacity_bytes", None)
        if cap:
            return int(cap) * 3 // 4
    except Exception:
        pass
    return 48 * 1024 * 1024


@functools.lru_cache(maxsize=None)
def _buffered_one_supported() -> bool:
    """Probe (eagerly, outside jit) whether pl.Buffered(1) single-buffering lowers."""
    try:
        def k(x_ref, o_ref):
            o_ref[...] = x_ref[...] + 1.0

        y = pl.pallas_call(
            k,
            out_shape=jax.ShapeDtypeStruct((8, 128), jnp.float32),
            grid=(1,),
            in_specs=[pl.BlockSpec((8, 128), lambda i: (0, 0),
                                   pipeline_mode=pl.Buffered(1))],
            out_specs=pl.BlockSpec((8, 128), lambda i: (0, 0)),
        )(jnp.zeros((8, 128), jnp.float32))
        jax.block_until_ready(y)
        return True
    except Exception:
        return False


def _mlp_chunk_size(intermediate: int) -> int:
    """Chunk the MLP intermediate dim so the (S, chunk) f32 activation stays small."""
    if intermediate <= 2048:
        return intermediate
    for c in (2048, 1536, 1024, 512, 384, 256, 128):
        if intermediate % c == 0:
            return c
    return intermediate


# ----------------------------- fused per-layer kernel -------------------------


def _clip_layer_kernel(*refs, num_heads, head_dim, hidden_size, mlp_chunk,
                       eps, scale, has_mask):
    if has_mask:
        h_ref, mask_ref = refs[0], refs[1]
        rest = refs[2:]
    else:
        h_ref, mask_ref = refs[0], None
        rest = refs[1:]
    (ln1g_ref, ln1b_ref, wqkv_ref, bqkv_ref, wo_ref, bo_ref,
     ln2g_ref, ln2b_ref, w1_ref, b1_ref, w2_ref, b2_ref,
     out_ref, q_buf, k_buf, v_buf, ctx_buf) = rest

    H, hd, D = num_heads, head_dim, hidden_size
    f32, bf16 = jnp.float32, jnp.bfloat16

    resid = h_ref[0].astype(f32)                                   # (S, D)

    # ---- LayerNorm 1 (biased variance, f32 statistics) ----
    mu = jnp.mean(resid, axis=-1, keepdims=True)
    var = jnp.mean((resid - mu) ** 2, axis=-1, keepdims=True)
    xn = (resid - mu) * jax.lax.rsqrt(var + eps)
    xn = xn * ln1g_ref[0] + ln1b_ref[0]

    # ---- fused QKV projection (bf16 MXU inputs, f32 accumulation) ----
    qkv = jnp.dot(xn.astype(bf16), wqkv_ref[...],
                  preferred_element_type=f32) + bqkv_ref[0]        # (S, 3D)

    # Split heads into (H, S, hd) VMEM scratch (no HBM round trip, no XLA
    # transpose); q is pre-scaled.
    for h in range(H):
        q_buf[h] = (qkv[:, h * hd:(h + 1) * hd] * scale).astype(q_buf.dtype)
        k_buf[h] = qkv[:, D + h * hd:D + (h + 1) * hd].astype(k_buf.dtype)
        v_buf[h] = qkv[:, 2 * D + h * hd:2 * D + (h + 1) * hd].astype(v_buf.dtype)

    # ---- multi-head attention, batched over the leading head dim ----
    s = jnp.einsum('hqd,hkd->hqk', q_buf[...], k_buf[...],
                   preferred_element_type=f32)                     # (H, S, S)
    if has_mask:
        s = s + mask_ref[0, 0][None]
    s = s - jnp.max(s, axis=-1, keepdims=True)
    p = jnp.exp(s)                                                 # f32
    inv = pl.reciprocal(jnp.sum(p, axis=-1, keepdims=True), approx=True)
    p16 = p.astype(bf16) * inv.astype(bf16)                        # bf16 normalize
    ctx = jnp.einsum('hqk,hkd->hqd', p16, v_buf[...],
                     preferred_element_type=f32)                   # (H, S, hd)

    # ---- out projection: assemble lane-dense (S, D) context, one full-depth
    #      (S,D)@(D,D) matmul (MXU fully fed; no (H,S,D) f32 intermediate) ----
    for h in range(H):
        ctx_buf[:, h * hd:(h + 1) * hd] = ctx[h].astype(ctx_buf.dtype)
    attn = jnp.dot(ctx_buf[...], wo_ref[...],
                   preferred_element_type=f32) + bo_ref[0]         # (S, D)

    h1 = resid + attn                                              # residual 1

    # ---- LayerNorm 2 ----
    mu2 = jnp.mean(h1, axis=-1, keepdims=True)
    var2 = jnp.mean((h1 - mu2) ** 2, axis=-1, keepdims=True)
    h1n = (h1 - mu2) * jax.lax.rsqrt(var2 + eps)
    h1n = (h1n * ln2g_ref[0] + ln2b_ref[0]).astype(bf16)

    # ---- MLP: fc1 -> quick_gelu -> fc2, chunked over the intermediate dim ----
    I = w1_ref.shape[1]
    b1 = b1_ref[0]
    acc = None
    for c0 in range(0, I, mlp_chunk):
        a = jnp.dot(h1n, w1_ref[:, c0:c0 + mlp_chunk],
                    preferred_element_type=f32) + b1[c0:c0 + mlp_chunk]
        a = (a * jax.nn.sigmoid(1.702 * a)).astype(bf16)           # quick_gelu
        part = jnp.dot(a, w2_ref[c0:c0 + mlp_chunk, :],
                       preferred_element_type=f32)
        acc = part if acc is None else acc + part
    mlp = acc + b2_ref[0]

    out_ref[0] = (h1 + mlp).astype(out_ref.dtype)                  # residual 2


# ----------------------------- wrappers ----------------------------------------


def clip_encoder_layer(hidden_states, add_mask, kp, *, num_heads, eps,
                       single_buffer_weights):
    """One CLIPEncoderLayer as a single fused Pallas kernel over grid=(B,)."""
    B, S, D = hidden_states.shape
    I = kp['w1'].shape[1]
    hd = D // num_heads
    scale = hd ** (-0.5)
    has_mask = add_mask is not None
    mlp_chunk = _mlp_chunk_size(I)
    vmem_limit = _vmem_limit_bytes()

    def vec(n):
        return pl.BlockSpec((1, n), lambda b: (0, 0))

    def wspec(shape):
        index_map = lambda b, _n=len(shape): (0,) * _n
        if single_buffer_weights:
            # constant-index weights never change block: single-buffer them.
            return pl.BlockSpec(shape, index_map, pipeline_mode=pl.Buffered(1))
        return pl.BlockSpec(shape, index_map)

    in_specs = [pl.BlockSpec((1, S, D), lambda b: (b, 0, 0))]
    args = [hidden_states]
    if has_mask:
        in_specs.append(pl.BlockSpec((1, 1, S, S), lambda b: (b, 0, 0, 0)))
        args.append(add_mask)
    in_specs += [
        vec(D), vec(D),                       # ln1 gamma / beta
        wspec((D, 3 * D)), vec(3 * D),        # w_qkv (bf16), b_qkv
        wspec((D, D)), vec(D),                # w_out (bf16), b_out
        vec(D), vec(D),                       # ln2 gamma / beta
        wspec((D, I)), vec(I),                # w1 (bf16), b1
        wspec((I, D)), vec(D),                # w2 (bf16), b2
    ]
    args += [kp['ln1_g'], kp['ln1_b'], kp['w_qkv'], kp['b_qkv'],
             kp['w_out'], kp['b_out'], kp['ln2_g'], kp['ln2_b'],
             kp['w1'], kp['b1'], kp['w2'], kp['b2']]

    itemsize = hidden_states.dtype.itemsize
    flops = (2 * B * S * D * 3 * D            # qkv
             + 4 * B * S * S * D              # scores + context
             + 2 * B * S * D * D              # out proj
             + 4 * B * S * D * I)             # mlp
    trans = B * num_heads * S * S + B * S * I
    bytes_acc = (2 * B * S * D * itemsize
                 + (B * S * S * 4 if has_mask else 0)
                 + (D * 3 * D + D * D + 2 * D * I) * 2
                 + (6 * D + 3 * D + I) * 4)

    return pl.pallas_call(
        functools.partial(_clip_layer_kernel, num_heads=num_heads, head_dim=hd,
                          hidden_size=D, mlp_chunk=mlp_chunk, eps=eps,
                          scale=scale, has_mask=has_mask),
        out_shape=jax.ShapeDtypeStruct((B, S, D), hidden_states.dtype),
        grid=(B,),
        in_specs=in_specs,
        out_specs=pl.BlockSpec((1, S, D), lambda b: (b, 0, 0)),
        scratch_shapes=[
            pltpu.VMEM((num_heads, S, hd), jnp.bfloat16),   # q (pre-scaled)
            pltpu.VMEM((num_heads, S, hd), jnp.bfloat16),   # k
            pltpu.VMEM((num_heads, S, hd), jnp.bfloat16),   # v
            pltpu.VMEM((S, D), jnp.bfloat16),               # assembled context
        ],
        input_output_aliases={0: 0},  # residual stream updated in place
        compiler_params=pltpu.CompilerParams(
            dimension_semantics=("parallel",),
            vmem_limit_bytes=vmem_limit),
        cost_estimate=pl.CostEstimate(flops=flops, transcendentals=trans,
                                      bytes_accessed=bytes_acc),
    )(*args)


def combine_masks(attention_mask, causal_attention_mask):
    """Fold the two additive masks into one f32 mask; None when neither given."""
    if attention_mask is None and causal_attention_mask is None:
        return None
    mask = None
    for m in (attention_mask, causal_attention_mask):
        if m is not None:
            m = m.astype(jnp.float32)
            mask = m if mask is None else mask + m
    return mask


def prepare_encoder_params(layer_params, num_heads):
    """One-time (outside jit) bf16 cast of matmul weights; f32 LN/bias params."""
    del num_heads  # head split happens in-kernel; weights stay (in, out)
    f32, bf16 = jnp.float32, jnp.bfloat16
    prepared = []
    for p in layer_params:
        prepared.append({
            'ln1_g': jnp.asarray(p['ln1_g'], f32), 'ln1_b': jnp.asarray(p['ln1_b'], f32),
            'w_qkv': jnp.asarray(p['w_qkv'], bf16), 'b_qkv': jnp.asarray(p['b_qkv'], f32),
            'w_out': jnp.asarray(p['w_out'], bf16), 'b_out': jnp.asarray(p['b_out'], f32),
            'ln2_g': jnp.asarray(p['ln2_g'], f32), 'ln2_b': jnp.asarray(p['ln2_b'], f32),
            'w1': jnp.asarray(p['w1'], bf16), 'b1': jnp.asarray(p['b1'], f32),
            'w2': jnp.asarray(p['w2'], bf16), 'b2': jnp.asarray(p['b2'], f32),
        })
    return prepared


def clip_encoder(inputs_embeds, attention_mask, causal_attention_mask,
                 prepared_layer_params, *, num_heads, eps=1e-5,
                 single_buffer_weights=False):
    """CLIPEncoder.forward: sequentially apply each fused encoder layer."""
    B, S, D = inputs_embeds.shape
    assert D % num_heads == 0
    add_mask = combine_masks(attention_mask, causal_attention_mask)
    hidden_states = inputs_embeds
    for kp in prepared_layer_params:
        hidden_states = clip_encoder_layer(
            hidden_states, add_mask, kp, num_heads=num_heads, eps=eps,
            single_buffer_weights=single_buffer_weights)
    return hidden_states


# ----------------------------- pure-JAX reference ------------------------------


def clip_encoder_reference(inputs_embeds, attention_mask, causal_attention_mask,
                           layer_params, *, num_heads, eps=1e-5):
    B, S, D = inputs_embeds.shape
    hd = D // num_heads
    scale = hd ** (-0.5)
    mask = combine_masks(attention_mask, causal_attention_mask)
    h = inputs_embeds.astype(jnp.float32)

    def ln(x, g, b):
        mu = x.mean(-1, keepdims=True)
        var = ((x - mu) ** 2).mean(-1, keepdims=True)
        return (x - mu) / jnp.sqrt(var + eps) * g[0] + b[0]

    def heads(t):
        return t.reshape(B, S, num_heads, hd).transpose(0, 2, 1, 3)

    for p in layer_params:
        xn = ln(h, p['ln1_g'], p['ln1_b'])
        qkv = xn @ p['w_qkv'] + p['b_qkv'][0]
        q, k, v = jnp.split(qkv, 3, axis=-1)
        qh, kh, vh = heads(q * scale), heads(k), heads(v)
        s = jnp.einsum('bhqd,bhkd->bhqk', qh, kh)
        if mask is not None:
            s = s + mask
        pa = jax.nn.softmax(s, axis=-1)
        ctx = jnp.einsum('bhqk,bhkd->bhqd', pa, vh)
        attn = ctx.transpose(0, 2, 1, 3).reshape(B, S, D) @ p['w_out'] + p['b_out'][0]
        h1 = h + attn
        h1n = ln(h1, p['ln2_g'], p['ln2_b'])
        a = h1n @ p['w1'] + p['b1'][0]
        a = a * jax.nn.sigmoid(1.702 * a)
        h = h1 + a @ p['w2'] + p['b2'][0]
    return h


# ----------------------------- parameter init ----------------------------------


def init_layer_params(key, hidden_size, intermediate_size):
    D, I = hidden_size, intermediate_size
    ks = jax.random.split(key, 4)
    std = 0.02
    return {
        "ln1_g": jnp.ones((1, D), jnp.float32),
        "ln1_b": jnp.zeros((1, D), jnp.float32),
        # weights stored as (in, out) so kernels do x @ W + b
        "w_qkv": (std * jax.random.normal(ks[0], (D, 3 * D))).astype(jnp.float32),
        "b_qkv": jnp.zeros((1, 3 * D), jnp.float32),
        "w_out": (std * jax.random.normal(ks[1], (D, D))).astype(jnp.float32),
        "b_out": jnp.zeros((1, D), jnp.float32),
        "ln2_g": jnp.ones((1, D), jnp.float32),
        "ln2_b": jnp.zeros((1, D), jnp.float32),
        "w1": (std * jax.random.normal(ks[2], (D, I))).astype(jnp.float32),
        "b1": jnp.zeros((1, I), jnp.float32),
        "w2": (std * jax.random.normal(ks[3], (I, D))).astype(jnp.float32),
        "b2": jnp.zeros((1, D), jnp.float32),
    }


# ----------------------------- main ---------------------------------------------


if __name__ == "__main__":
    B, S, D = 2, 8, 32
    num_heads = 4
    intermediate = 64
    num_layers = 2

    key = jax.random.PRNGKey(0)
    k_in, k_layers = jax.random.split(key)

    inputs_embeds = jax.random.normal(k_in, (B, S, D), dtype=jnp.float32)

    # additive masks, shape (B, 1, S, S)
    neg = jnp.float32(-1e9)
    causal = jnp.triu(jnp.full((S, S), neg, jnp.float32), k=1)
    causal_attention_mask = jnp.broadcast_to(causal, (B, 1, S, S))
    attention_mask = jnp.zeros((B, 1, S, S), jnp.float32)  # no padding

    layer_keys = jax.random.split(k_layers, num_layers)
    layer_params = [init_layer_params(k, D, intermediate) for k in layer_keys]

    # pure-JAX f32 reference (kernel path uses bf16 matmuls)
    ref = clip_encoder_reference(inputs_embeds, attention_mask,
                                 causal_attention_mask, layer_params,
                                 num_heads=num_heads, eps=1e-5)

    # one-time weight preparation (bf16 casts hoisted out of the forward pass)
    prepared = prepare_encoder_params(layer_params, num_heads)
    single_buf = _buffered_one_supported()

    run = jax.jit(functools.partial(clip_encoder, num_heads=num_heads, eps=1e-5,
                                    single_buffer_weights=single_buf))
    out = run(inputs_embeds, attention_mask, causal_attention_mask, prepared)
    jax.block_until_ready(out)

    assert out.shape == (B, S, D)
    assert jnp.allclose(out.astype(jnp.float32), ref, atol=5e-2, rtol=5e-2), (
        float(jnp.max(jnp.abs(out.astype(jnp.float32) - ref))))
    print("KERNEL_OK")
</pallas_src>

<mosaic_0001>
module attributes {stable_mosaic.version = 11 : i64} {
  func.func @k(%arg0: i32, %arg1: memref<8x128xf32, #tpu.memory_space<vmem>>, %arg2: memref<8x128xf32, #tpu.memory_space<vmem>>) attributes {dimension_semantics = [#tpu.dimension_semantics<arbitrary>], iteration_bounds = array<i64: 1>, scalar_prefetch = 0 : i64, scratch_operands = 0 : i64, tpu.core_type = #tpu.core_type<tc>, window_params = [{pipeline_mode = #tpu.pipeline_mode<synchronous>, transform_indices = @transform_0, window_bounds = array<i64: 8, 128>}, {pipeline_mode = #tpu.pipeline_mode<synchronous>, transform_indices = @transform_1, window_bounds = array<i64: 8, 128>}]} {
    %c0 = arith.constant 0 : index
    %c0_0 = arith.constant 0 : index
    %0 = vector.load %arg1[%c0, %c0_0] : memref<8x128xf32, #tpu.memory_space<vmem>>, vector<8x128xf32>
    %cst = arith.constant 1.000000e+00 : f32
    %1 = vector.broadcast %cst : f32 to vector<8x128xf32>
    %2 = arith.addf %0, %1 : vector<8x128xf32>
    %c0_1 = arith.constant 0 : index
    %c0_2 = arith.constant 0 : index
    %3 = vector.load %arg2[%c0_1, %c0_2] : memref<8x128xf32, #tpu.memory_space<vmem>>, vector<8x128xf32>
    tpu.vector_store %arg2[%c0_1, %c0_2], %2 {strides = array<i32>} : memref<8x128xf32, #tpu.memory_space<vmem>>, vector<8x128xf32>,
    return
  }
  func.func @transform_0(%arg0: i32) -> (i32, i32) {
    %c0_i32 = arith.constant 0 : i32
    %c0_i32_0 = arith.constant 0 : i32
    %c0_i32_1 = arith.constant 0 : i32
    return %c0_i32, %c0_i32_0 : i32, i32
  }
  func.func @transform_1(%arg0: i32) -> (i32, i32) {
    %c0_i32 = arith.constant 0 : i32
    %c0_i32_0 = arith.constant 0 : i32
    %c0_i32_1 = arith.constant 0 : i32
    return %c0_i32, %c0_i32_0 : i32, i32
  }
}

module attributes {stable_mosaic.version = 11 : i64} {
  func.func @_clip_layer_kernel(%arg0: i32, %arg1: memref<1x8x32xf32, #tpu.memory_space<vmem>>, %arg2: memref<1x1x8x8xf32, #tpu.memory_space<vmem>>, %arg3: memref<1x32xf32, #tpu.memory_space<vmem>>, %arg4: memref<1x32xf32, #tpu.memory_space<vmem>>, %arg5: memref<32x96xbf16, #tpu.memory_space<vmem>>, %arg6: memref<1x96xf32, #tpu.memory_space<vmem>>, %arg7: memref<32x32xbf16, #tpu.memory_space<vmem>>, %arg8: memref<1x32xf32, #tpu.memory_space<vmem>>, %arg9: memref<1x32xf32, #tpu.memory_space<vmem>>, %arg10: memref<1x32xf32, #tpu.memory_space<vmem>>, %arg11: memref<32x64xbf16, #tpu.memory_space<vmem>>, %arg12: memref<1x64xf32, #tpu.memory_space<vmem>>, %arg13: memref<64x32xbf16, #tpu.memory_space<vmem>>, %arg14: memref<1x32xf32, #tpu.memory_space<vmem>>, %arg15: memref<1x8x32xf32, #tpu.memory_space<vmem>>, %arg16: memref<4x8x8xbf16, #tpu.memory_space<vmem>>, %arg17: memref<4x8x8xbf16, #tpu.memory_space<vmem>>, %arg18: memref<4x8x8xbf16, #tpu.memory_space<vmem>>, %arg19: memref<8x32xbf16, #tpu.memory_space<vmem>>) attributes {dimension_semantics = [#tpu.dimension_semantics<parallel>], iteration_bounds = array<i64: 2>, scalar_prefetch = 0 : i64, scratch_operands = 4 : i64, tpu.core_type = #tpu.core_type<tc>, window_params = [{transform_indices = @transform_0, window_bounds = array<i64: 1, 8, 32>}, {transform_indices = @transform_1, window_bounds = array<i64: 1, 1, 8, 8>}, {pipeline_mode = #tpu.pipeline_mode<synchronous>, transform_indices = @transform_2, window_bounds = array<i64: 1, 32>}, {pipeline_mode = #tpu.pipeline_mode<synchronous>, transform_indices = @transform_3, window_bounds = array<i64: 1, 32>}, {pipeline_mode = #tpu.pipeline_mode<synchronous>, transform_indices = @transform_4, window_bounds = array<i64: 32, 96>}, {pipeline_mode = #tpu.pipeline_mode<synchronous>, transform_indices = @transform_5, window_bounds = array<i64: 1, 96>}, {pipeline_mode = #tpu.pipeline_mode<synchronous>, transform_indices = @transform_6, window_bounds = array<i64: 32, 32>}, {pipeline_mode = #tpu.pipeline_mode<synchronous>, transform_indices = @transform_7, window_bounds = array<i64: 1, 32>}, {pipeline_mode = #tpu.pipeline_mode<synchronous>, transform_indices = @transform_8, window_bounds = array<i64: 1, 32>}, {pipeline_mode = #tpu.pipeline_mode<synchronous>, transform_indices = @transform_9, window_bounds = array<i64: 1, 32>}, {pipeline_mode = #tpu.pipeline_mode<synchronous>, transform_indices = @transform_10, window_bounds = array<i64: 32, 64>}, {pipeline_mode = #tpu.pipeline_mode<synchronous>, transform_indices = @transform_11, window_bounds = array<i64: 1, 64>}, {pipeline_mode = #tpu.pipeline_mode<synchronous>, transform_indices = @transform_12, window_bounds = array<i64: 64, 32>}, {pipeline_mode = #tpu.pipeline_mode<synchronous>, transform_indices = @transform_13, window_bounds = array<i64: 1, 32>}, {transform_indices = @transform_14, window_bounds = array<i64: 1, 8, 32>}]} {
    %c0 = arith.constant 0 : index
    %c0_0 = arith.constant 0 : index
    %c0_1 = arith.constant 0 : index
    %0 = vector.load %arg1[%c0, %c0_0, %c0_1] : memref<1x8x32xf32, #tpu.memory_space<vmem>>, vector<1x8x32xf32>
    %1 = vector.shape_cast %0 : vector<1x8x32xf32> to vector<8x32xf32>
    %cst = arith.constant dense<0.000000e+00> : vector<8xf32>
    %2 = vector.multi_reduction <add>, %1, %cst [1] : vector<8x32xf32> to vector<8xf32>
    %3 = vector.shape_cast %2 : vector<8xf32> to vector<8x1xf32>
    %cst_2 = arith.constant 3.200000e+01 : f32
    %4 = vector.broadcast %cst_2 : f32 to vector<8x1xf32>
    %5 = arith.divf %3, %4 : vector<8x1xf32>
    %6 = vector.broadcast %5 : vector<8x1xf32> to vector<8x32xf32>
    %7 = arith.subf %1, %6 : vector<8x32xf32>
    %8 = arith.mulf %7, %7 : vector<8x32xf32>
    %cst_3 = arith.constant dense<0.000000e+00> : vector<8xf32>
    %9 = vector.multi_reduction <add>, %8, %cst_3 [1] : vector<8x32xf32> to vector<8xf32>
    %10 = vector.shape_cast %9 : vector<8xf32> to vector<8x1xf32>
    %cst_4 = arith.constant 3.200000e+01 : f32
    %11 = vector.broadcast %cst_4 : f32 to vector<8x1xf32>
    %12 = arith.divf %10, %11 : vector<8x1xf32>
    %13 = vector.broadcast %5 : vector<8x1xf32> to vector<8x32xf32>
    %14 = arith.subf %1, %13 : vector<8x32xf32>
    %cst_5 = arith.constant 9.99999974E-6 : f32
    %15 = vector.broadcast %cst_5 : f32 to vector<8x1xf32>
    %16 = arith.addf %12, %15 : vector<8x1xf32>
    %17 = math.rsqrt %16 : vector<8x1xf32>
    %18 = vector.broadcast %17 : vector<8x1xf32> to vector<8x32xf32>
    %19 = arith.mulf %14, %18 : vector<8x32xf32>
    %c0_6 = arith.constant 0 : index
    %c0_7 = arith.constant 0 : index
    %20 = vector.load %arg3[%c0_6, %c0_7] : memref<1x32xf32, #tpu.memory_space<vmem>>, vector<1x32xf32>
    %21 = vector.shape_cast %20 : vector<1x32xf32> to vector<32xf32>
    %22 = vector.shape_cast %21 : vector<32xf32> to vector<1x32xf32>
    %23 = vector.broadcast %22 : vector<1x32xf32> to vector<8x32xf32>
    %24 = arith.mulf %19, %23 : vector<8x32xf32>
    %c0_8 = arith.constant 0 : index
    %c0_9 = arith.constant 0 : index
    %25 = vector.load %arg4[%c0_8, %c0_9] : memref<1x32xf32, #tpu.memory_space<vmem>>, vector<1x32xf32>
    %26 = vector.shape_cast %25 : vector<1x32xf32> to vector<32xf32>
    %27 = vector.shape_cast %26 : vector<32xf32> to vector<1x32xf32>
    %28 = vector.broadcast %27 : vector<1x32xf32> to vector<8x32xf32>
    %29 = arith.addf %24, %28 : vector<8x32xf32>
    %30 = arith.truncf %29 : vector<8x32xf32> to vector<8x32xbf16>
    %c0_10 = arith.constant 0 : index
    %c0_11 = arith.constant 0 : index
    %31 = vector.load %arg5[%c0_10, %c0_11] : memref<32x96xbf16, #tpu.memory_space<vmem>>, vector<32x96xbf16>
    %cst_12 = arith.constant dense<0.000000e+00> : vector<8x96xf32>
    %32 = tpu.matmul %30, %31, %cst_12 {dimension_numbers = #tpu.dot_dimension_numbers<[1], [0], [0], [1], [0, 0, 1, 1], [], []>} : vector<8x32xbf16>, vector<32x96xbf16>, vector<8x96xf32> -> vector<8x96xf32>
    %c0_13 = arith.constant 0 : index
    %c0_14 = arith.constant 0 : index
    %33 = vector.load %arg6[%c0_13, %c0_14] : memref<1x96xf32, #tpu.memory_space<vmem>>, vector<1x96xf32>
    %34 = vector.shape_cast %33 : vector<1x96xf32> to vector<96xf32>
    %35 = vector.shape_cast %34 : vector<96xf32> to vector<1x96xf32>
    %36 = vector.broadcast %35 : vector<1x96xf32> to vector<8x96xf32>
    %37 = arith.addf %32, %36 : vector<8x96xf32>
    %38 = vector.extract_strided_slice %37 {offsets = [0, 0], sizes = [8, 8], strides = [1, 1]} : vector<8x96xf32> to vector<8x8xf32>
    %cst_15 = arith.constant 0.353553385 : f32
    %39 = vector.broadcast %cst_15 : f32 to vector<8x8xf32>
    %40 = arith.mulf %38, %39 : vector<8x8xf32>
    %41 = arith.truncf %40 : vector<8x8xf32> to vector<8x8xbf16>
    %c0_16 = arith.constant 0 : index
    %c0_17 = arith.constant 0 : index
    %c0_18 = arith.constant 0 : index
    %42 = vector.load %arg16[%c0_16, %c0_17, %c0_18] : memref<4x8x8xbf16, #tpu.memory_space<vmem>>, vector<1x8x8xbf16>
    %43 = vector.shape_cast %42 : vector<1x8x8xbf16> to vector<8x8xbf16>
    %44 = vector.shape_cast %41 : vector<8x8xbf16> to vector<1x8x8xbf16>
    tpu.vector_store %arg16[%c0_16, %c0_17, %c0_18], %44 {strides = array<i32>} : memref<4x8x8xbf16, #tpu.memory_space<vmem>>, vector<1x8x8xbf16>,
    %45 = vector.extract_strided_slice %37 {offsets = [0, 32], sizes = [8, 8], strides = [1, 1]} : vector<8x96xf32> to vector<8x8xf32>
    %46 = arith.truncf %45 : vector<8x8xf32> to vector<8x8xbf16>
    %c0_19 = arith.constant 0 : index
    %c0_20 = arith.constant 0 : index
    %c0_21 = arith.constant 0 : index
    %47 = vector.load %arg17[%c0_19, %c0_20, %c0_21] : memref<4x8x8xbf16, #tpu.memory_space<vmem>>, vector<1x8x8xbf16>
    %48 = vector.shape_cast %47 : vector<1x8x8xbf16> to vector<8x8xbf16>
    %49 = vector.shape_cast %46 : vector<8x8xbf16> to vector<1x8x8xbf16>
    tpu.vector_store %arg17[%c0_19, %c0_20, %c0_21], %49 {strides = array<i32>} : memref<4x8x8xbf16, #tpu.memory_space<vmem>>, vector<1x8x8xbf16>,
    %50 = vector.extract_strided_slice %37 {offsets = [0, 64], sizes = [8, 8], strides = [1, 1]} : vector<8x96xf32> to vector<8x8xf32>
    %51 = arith.truncf %50 : vector<8x8xf32> to vector<8x8xbf16>
    %c0_22 = arith.constant 0 : index
    %c0_23 = arith.constant 0 : index
    %c0_24 = arith.constant 0 : index
    %52 = vector.load %arg18[%c0_22, %c0_23, %c0_24] : memref<4x8x8xbf16, #tpu.memory_space<vmem>>, vector<1x8x8xbf16>
    %53 = vector.shape_cast %52 : vector<1x8x8xbf16> to vector<8x8xbf16>
    %54 = vector.shape_cast %51 : vector<8x8xbf16> to vector<1x8x8xbf16>
    tpu.vector_store %arg18[%c0_22, %c0_23, %c0_24], %54 {strides = array<i32>} : memref<4x8x8xbf16, #tpu.memory_space<vmem>>, vector<1x8x8xbf16>,
    %55 = vector.extract_strided_slice %37 {offsets = [0, 8], sizes = [8, 8], strides = [1, 1]} : vector<8x96xf32> to vector<8x8xf32>
    %cst_25 = arith.constant 0.353553385 : f32
    %56 = vector.broadcast %cst_25 : f32 to vector<8x8xf32>
    %57 = arith.mulf %55, %56 : vector<8x8xf32>
    %58 = arith.truncf %57 : vector<8x8xf32> to vector<8x8xbf16>
    %c1 = arith.constant 1 : index
    %c0_26 = arith.constant 0 : index
    %c0_27 = arith.constant 0 : index
    %59 = vector.load %arg16[%c1, %c0_26, %c0_27] : memref<4x8x8xbf16, #tpu.memory_space<vmem>>, vector<1x8x8xbf16>
    %60 = vector.shape_cast %59 : vector<1x8x8xbf16> to vector<8x8xbf16>
    %61 = vector.shape_cast %58 : vector<8x8xbf16> to vector<1x8x8xbf16>
    tpu.vector_store %arg16[%c1, %c0_26, %c0_27], %61 {strides = array<i32>} : memref<4x8x8xbf16, #tpu.memory_space<vmem>>, vector<1x8x8xbf16>,
    %62 = vector.extract_strided_slice %37 {offsets = [0, 40], sizes = [8, 8], strides = [1, 1]} : vector<8x96xf32> to vector<8x8xf32>
    %63 = arith.truncf %62 : vector<8x8xf32> to vector<8x8xbf16>
    %c1_28 = arith.constant 1 : index
    %c0_29 = arith.constant 0 : index
    %c0_30 = arith.constant 0 : index
    %64 = vector.load %arg17[%c1_28, %c0_29, %c0_30] : memref<4x8x8xbf16, #tpu.memory_space<vmem>>, vector<1x8x8xbf16>
    %65 = vector.shape_cast %64 : vector<1x8x8xbf16> to vector<8x8xbf16>
    %66 = vector.shape_cast %63 : vector<8x8xbf16> to vector<1x8x8xbf16>
    tpu.vector_store %arg17[%c1_28, %c0_29, %c0_30], %66 {strides = array<i32>} : memref<4x8x8xbf16, #tpu.memory_space<vmem>>, vector<1x8x8xbf16>,
    %67 = vector.extract_strided_slice %37 {offsets = [0, 72], sizes = [8, 8], strides = [1, 1]} : vector<8x96xf32> to vector<8x8xf32>
    %68 = arith.truncf %67 : vector<8x8xf32> to vector<8x8xbf16>
    %c1_31 = arith.constant 1 : index
    %c0_32 = arith.constant 0 : index
    %c0_33 = arith.constant 0 : index
    %69 = vector.load %arg18[%c1_31, %c0_32, %c0_33] : memref<4x8x8xbf16, #tpu.memory_space<vmem>>, vector<1x8x8xbf16>
    %70 = vector.shape_cast %69 : vector<1x8x8xbf16> to vector<8x8xbf16>
    %71 = vector.shape_cast %68 : vector<8x8xbf16> to vector<1x8x8xbf16>
    tpu.vector_store %arg18[%c1_31, %c0_32, %c0_33], %71 {strides = array<i32>} : memref<4x8x8xbf16, #tpu.memory_space<vmem>>, vector<1x8x8xbf16>,
    %72 = vector.extract_strided_slice %37 {offsets = [0, 16], sizes = [8, 8], strides = [1, 1]} : vector<8x96xf32> to vector<8x8xf32>
    %cst_34 = arith.constant 0.353553385 : f32
    %73 = vector.broadcast %cst_34 : f32 to vector<8x8xf32>
    %74 = arith.mulf %72, %73 : vector<8x8xf32>
    %75 = arith.truncf %74 : vector<8x8xf32> to vector<8x8xbf16>
    %c2 = arith.constant 2 : index
    %c0_35 = arith.constant 0 : index
    %c0_36 = arith.constant 0 : index
    %76 = vector.load %arg16[%c2, %c0_35, %c0_36] : memref<4x8x8xbf16, #tpu.memory_space<vmem>>, vector<1x8x8xbf16>
    %77 = vector.shape_cast %76 : vector<1x8x8xbf16> to vector<8x8xbf16>
    %78 = vector.shape_cast %75 : vector<8x8xbf16> to vector<1x8x8xbf16>
    tpu.vector_store %arg16[%c2, %c0_35, %c0_36], %78 {strides = array<i32>} : memref<4x8x8xbf16, #tpu.memory_space<vmem>>, vector<1x8x8xbf16>,
    %79 = vector.extract_strided_slice %37 {offsets = [0, 48], sizes = [8, 8], strides = [1, 1]} : vector<8x96xf32> to vector<8x8xf32>
    %80 = arith.truncf %79 : vector<8x8xf32> to vector<8x8xbf16>
    %c2_37 = arith.constant 2 : index
    %c0_38 = arith.constant 0 : index
    %c0_39 = arith.constant 0 : index
    %81 = vector.load %arg17[%c2_37, %c0_38, %c0_39] : memref<4x8x8xbf16, #tpu.memory_space<vmem>>, vector<1x8x8xbf16>
    %82 = vector.shape_cast %81 : vector<1x8x8xbf16> to vector<8x8xbf16>
    %83 = vector.shape_cast %80 : vector<8x8xbf16> to vector<1x8x8xbf16>
    tpu.vector_store %arg17[%c2_37, %c0_38, %c0_39], %83 {strides = array<i32>} : memref<4x8x8xbf16, #tpu.memory_space<vmem>>, vector<1x8x8xbf16>,
    %84 = vector.extract_strided_slice %37 {offsets = [0, 80], sizes = [8, 8], strides = [1, 1]} : vector<8x96xf32> to vector<8x8xf32>
    %85 = arith.truncf %84 : vector<8x8xf32> to vector<8x8xbf16>
    %c2_40 = arith.constant 2 : index
    %c0_41 = arith.constant 0 : index
    %c0_42 = arith.constant 0 : index
    %86 = vector.load %arg18[%c2_40, %c0_41, %c0_42] : memref<4x8x8xbf16, #tpu.memory_space<vmem>>, vector<1x8x8xbf16>
    %87 = vector.shape_cast %86 : vector<1x8x8xbf16> to vector<8x8xbf16>
    %88 = vector.shape_cast %85 : vector<8x8xbf16> to vector<1x8x8xbf16>
    tpu.vector_store %arg18[%c2_40, %c0_41, %c0_42], %88 {strides = array<i32>} : memref<4x8x8xbf16, #tpu.memory_space<vmem>>, vector<1x8x8xbf16>,
    %89 = vector.extract_strided_slice %37 {offsets = [0, 24], sizes = [8, 8], strides = [1, 1]} : vector<8x96xf32> to vector<8x8xf32>
    %cst_43 = arith.constant 0.353553385 : f32
    %90 = vector.broadcast %cst_43 : f32 to vector<8x8xf32>
    %91 = arith.mulf %89, %90 : vector<8x8xf32>
    %92 = arith.truncf %91 : vector<8x8xf32> to vector<8x8xbf16>
    %c3 = arith.constant 3 : index
    %c0_44 = arith.constant 0 : index
    %c0_45 = arith.constant 0 : index
    %93 = vector.load %arg16[%c3, %c0_44, %c0_45] : memref<4x8x8xbf16, #tpu.memory_space<vmem>>, vector<1x8x8xbf16>
    %94 = vector.shape_cast %93 : vector<1x8x8xbf16> to vector<8x8xbf16>
    %95 = vector.shape_cast %92 : vector<8x8xbf16> to vector<1x8x8xbf16>
    tpu.vector_store %arg16[%c3, %c0_44, %c0_45], %95 {strides = array<i32>} : memref<4x8x8xbf16, #tpu.memory_space<vmem>>, vector<1x8x8xbf16>,
    %96 = vector.extract_strided_slice %37 {offsets = [0, 56], sizes = [8, 8], strides = [1, 1]} : vector<8x96xf32> to vector<8x8xf32>
    %97 = arith.truncf %96 : vector<8x8xf32> to vector<8x8xbf16>
    %c3_46 = arith.constant 3 : index
    %c0_47 = arith.constant 0 : index
    %c0_48 = arith.constant 0 : index
    %98 = vector.load %arg17[%c3_46, %c0_47, %c0_48] : memref<4x8x8xbf16, #tpu.memory_space<vmem>>, vector<1x8x8xbf16>
    %99 = vector.shape_cast %98 : vector<1x8x8xbf16> to vector<8x8xbf16>
    %100 = vector.shape_cast %97 : vector<8x8xbf16> to vector<1x8x8xbf16>
    tpu.vector_store %arg17[%c3_46, %c0_47, %c0_48], %100 {strides = array<i32>} : memref<4x8x8xbf16, #tpu.memory_space<vmem>>, vector<1x8x8xbf16>,
    %101 = vector.extract_strided_slice %37 {offsets = [0, 88], sizes = [8, 8], strides = [1, 1]} : vector<8x96xf32> to vector<8x8xf32>
    %102 = arith.truncf %101 : vector<8x8xf32> to vector<8x8xbf16>
    %c3_49 = arith.constant 3 : index
    %c0_50 = arith.constant 0 : index
    %c0_51 = arith.constant 0 : index
    %103 = vector.load %arg18[%c3_49, %c0_50, %c0_51] : memref<4x8x8xbf16, #tpu.memory_space<vmem>>, vector<1x8x8xbf16>
    %104 = vector.shape_cast %103 : vector<1x8x8xbf16> to vector<8x8xbf16>
    %105 = vector.shape_cast %102 : vector<8x8xbf16> to vector<1x8x8xbf16>
    tpu.vector_store %arg18[%c3_49, %c0_50, %c0_51], %105 {strides = array<i32>} : memref<4x8x8xbf16, #tpu.memory_space<vmem>>, vector<1x8x8xbf16>,
    %c0_52 = arith.constant 0 : index
    %c0_53 = arith.constant 0 : index
    %c0_54 = arith.constant 0 : index
    %106 = vector.load %arg16[%c0_52, %c0_53, %c0_54] : memref<4x8x8xbf16, #tpu.memory_space<vmem>>, vector<4x8x8xbf16>
    %c0_55 = arith.constant 0 : index
    %c0_56 = arith.constant 0 : index
    %c0_57 = arith.constant 0 : index
    %107 = vector.load %arg17[%c0_55, %c0_56, %c0_57] : memref<4x8x8xbf16, #tpu.memory_space<vmem>>, vector<4x8x8xbf16>
    "tpu.trace_start"() <{level = 10 : i32, message = "hqd,hkd->hqk"}> : () -> ()
    %cst_58 = arith.constant dense<0.000000e+00> : vector<4x8x8xf32>
    %108 = tpu.matmul %106, %107, %cst_58 {dimension_numbers = #tpu.dot_dimension_numbers<[2], [2], [1], [1], [0, 0, 0, 1, 1, 1], [0], [0]>} : vector<4x8x8xbf16>, vector<4x8x8xbf16>, vector<4x8x8xf32> -> vector<4x8x8xf32>
    "tpu.trace_stop"() : () -> ()
    %c0_59 = arith.constant 0 : index
    %c0_60 = arith.constant 0 : index
    %c0_61 = arith.constant 0 : index
    %c0_62 = arith.constant 0 : index
    %109 = vector.load %arg2[%c0_59, %c0_60, %c0_61, %c0_62] : memref<1x1x8x8xf32, #tpu.memory_space<vmem>>, vector<1x1x8x8xf32>
    %110 = vector.shape_cast %109 : vector<1x1x8x8xf32> to vector<8x8xf32>
    %111 = vector.shape_cast %110 : vector<8x8xf32> to vector<1x8x8xf32>
    %112 = vector.broadcast %111 : vector<1x8x8xf32> to vector<4x8x8xf32>
    %113 = arith.addf %108, %112 : vector<4x8x8xf32>
    %cst_63 = arith.constant dense<0xFF800000> : vector<4x8xf32>
    %114 = vector.multi_reduction <maximumf>, %113, %cst_63 [2] : vector<4x8x8xf32> to vector<4x8xf32>
    %115 = vector.shape_cast %114 : vector<4x8xf32> to vector<4x8x1xf32>
    %116 = vector.broadcast %115 : vector<4x8x1xf32> to vector<4x8x8xf32>
    %117 = arith.subf %113, %116 : vector<4x8x8xf32>
    %118 = math.exp %117 : vector<4x8x8xf32>
    %cst_64 = arith.constant dense<0.000000e+00> : vector<4x8xf32>
    %119 = vector.multi_reduction <add>, %118, %cst_64 [2] : vector<4x8x8xf32> to vector<4x8xf32>
    %120 = vector.shape_cast %119 : vector<4x8xf32> to vector<4x8x1xf32>
    %121 = tpu.reciprocal %120 {approx = true} : vector<4x8x1xf32> -> vector<4x8x1xf32>
    %122 = arith.truncf %118 : vector<4x8x8xf32> to vector<4x8x8xbf16>
    %123 = arith.truncf %121 : vector<4x8x1xf32> to vector<4x8x1xbf16>
    %124 = vector.broadcast %123 : vector<4x8x1xbf16> to vector<4x8x8xbf16>
    %125 = arith.mulf %122, %124 : vector<4x8x8xbf16>
    %c0_65 = arith.constant 0 : index
    %c0_66 = arith.constant 0 : index
    %c0_67 = arith.constant 0 : index
    %126 = vector.load %arg18[%c0_65, %c0_66, %c0_67] : memref<4x8x8xbf16, #tpu.memory_space<vmem>>, vector<4x8x8xbf16>
    "tpu.trace_start"() <{level = 10 : i32, message = "hqk,hkd->hqd"}> : () -> ()
    %cst_68 = arith.constant dense<0.000000e+00> : vector<4x8x8xf32>
    %127 = tpu.matmul %125, %126, %cst_68 {dimension_numbers = #tpu.dot_dimension_numbers<[2], [1], [1], [2], [0, 0, 0, 1, 1, 2], [0], [0]>} : vector<4x8x8xbf16>, vector<4x8x8xbf16>, vector<4x8x8xf32> -> vector<4x8x8xf32>
    "tpu.trace_stop"() : () -> ()
    %128 = vector.extract_strided_slice %127 {offsets = [0, 0, 0], sizes = [1, 8, 8], strides = [1, 1, 1]} : vector<4x8x8xf32> to vector<1x8x8xf32>
    %129 = vector.shape_cast %128 : vector<1x8x8xf32> to vector<8x8xf32>
    %130 = arith.truncf %129 : vector<8x8xf32> to vector<8x8xbf16>
    %c0_69 = arith.constant 0 : index
    %c0_70 = arith.constant 0 : index
    %131 = vector.load %arg19[%c0_69, %c0_70] : memref<8x32xbf16, #tpu.memory_space<vmem>>, vector<8x8xbf16>
    tpu.vector_store %arg19[%c0_69, %c0_70], %130 {strides = array<i32>} : memref<8x32xbf16, #tpu.memory_space<vmem>>, vector<8x8xbf16>,
    %132 = vector.extract_strided_slice %127 {offsets = [1, 0, 0], sizes = [1, 8, 8], strides = [1, 1, 1]} : vector<4x8x8xf32> to vector<1x8x8xf32>
    %133 = vector.shape_cast %132 : vector<1x8x8xf32> to vector<8x8xf32>
    %134 = arith.truncf %133 : vector<8x8xf32> to vector<8x8xbf16>
    %c0_71 = arith.constant 0 : index
    %c8 = arith.constant 8 : index
    %135 = vector.load %arg19[%c0_71, %c8] : memref<8x32xbf16, #tpu.memory_space<vmem>>, vector<8x8xbf16>
    tpu.vector_store %arg19[%c0_71, %c8], %134 {strides = array<i32>} : memref<8x32xbf16, #tpu.memory_space<vmem>>, vector<8x8xbf16>,
    %136 = vector.extract_strided_slice %127 {offsets = [2, 0, 0], sizes = [1, 8, 8], strides = [1, 1, 1]} : vector<4x8x8xf32> to vector<1x8x8xf32>
    %137 = vector.shape_cast %136 : vector<1x8x8xf32> to vector<8x8xf32>
    %138 = arith.truncf %137 : vector<8x8xf32> to vector<8x8xbf16>
    %c0_72 = arith.constant 0 : index
    %c16 = arith.constant 16 : index
    %139 = vector.load %arg19[%c0_72, %c16] : memref<8x32xbf16, #tpu.memory_space<vmem>>, vector<8x8xbf16>
    tpu.vector_store %arg19[%c0_72, %c16], %138 {strides = array<i32>} : memref<8x32xbf16, #tpu.memory_space<vmem>>, vector<8x8xbf16>,
    %140 = vector.extract_strided_slice %127 {offsets = [3, 0, 0], sizes = [1, 8, 8], strides = [1, 1, 1]} : vector<4x8x8xf32> to vector<1x8x8xf32>
    %141 = vector.shape_cast %140 : vector<1x8x8xf32> to vector<8x8xf32>
    %142 = arith.truncf %141 : vector<8x8xf32> to vector<8x8xbf16>
    %c0_73 = arith.constant 0 : index
    %c24 = arith.constant 24 : index
    %143 = vector.load %arg19[%c0_73, %c24] : memref<8x32xbf16, #tpu.memory_space<vmem>>, vector<8x8xbf16>
    tpu.vector_store %arg19[%c0_73, %c24], %142 {strides = array<i32>} : memref<8x32xbf16, #tpu.memory_space<vmem>>, vector<8x8xbf16>,
    %c0_74 = arith.constant 0 : index
    %c0_75 = arith.constant 0 : index
    %144 = vector.load %arg19[%c0_74, %c0_75] : memref<8x32xbf16, #tpu.memory_space<vmem>>, vector<8x32xbf16>
    %c0_76 = arith.constant 0 : index
    %c0_77 = arith.constant 0 : index
    %145 = vector.load %arg7[%c0_76, %c0_77] : memref<32x32xbf16, #tpu.memory_space<vmem>>, vector<32x32xbf16>
    %cst_78 = arith.constant dense<0.000000e+00> : vector<8x32xf32>
    %146 = tpu.matmul %144, %145, %cst_78 {dimension_numbers = #tpu.dot_dimension_numbers<[1], [0], [0], [1], [0, 0, 1, 1], [], []>} : vector<8x32xbf16>, vector<32x32xbf16>, vector<8x32xf32> -> vector<8x32xf32>
    %c0_79 = arith.constant 0 : index
    %c0_80 = arith.constant 0 : index
    %147 = vector.load %arg8[%c0_79, %c0_80] : memref<1x32xf32, #tpu.memory_space<vmem>>, vector<1x32xf32>
    %148 = vector.shape_cast %147 : vector<1x32xf32> to vector<32xf32>
    %149 = vector.shape_cast %148 : vector<32xf32> to vector<1x32xf32>
    %150 = vector.broadcast %149 : vector<1x32xf32> to vector<8x32xf32>
    %151 = arith.addf %146, %150 : vector<8x32xf32>
    %152 = arith.addf %1, %151 : vector<8x32xf32>
    %cst_81 = arith.constant dense<0.000000e+00> : vector<8xf32>
    %153 = vector.multi_reduction <add>, %152, %cst_81 [1] : vector<8x32xf32> to vector<8xf32>
    %154 = vector.shape_cast %153 : vector<8xf32> to vector<8x1xf32>
    %cst_82 = arith.constant 3.200000e+01 : f32
    %155 = vector.broadcast %cst_82 : f32 to vector<8x1xf32>
    %156 = arith.divf %154, %155 : vector<8x1xf32>
    %157 = vector.broadcast %156 : vector<8x1xf32> to vector<8x32xf32>
    %158 = arith.subf %152, %157 : vector<8x32xf32>
    %159 = arith.mulf %158, %158 : vector<8x32xf32>
    %cst_83 = arith.constant dense<0.000000e+00> : vector<8xf32>
    %160 = vector.multi_reduction <add>, %159, %cst_83 [1] : vector<8x32xf32> to vector<8xf32>
    %161 = vector.shape_cast %160 : vector<8xf32> to vector<8x1xf32>
    %cst_84 = arith.constant 3.200000e+01 : f32
    %162 = vector.broadcast %cst_84 : f32 to vector<8x1xf32>
    %163 = arith.divf %161, %162 : vector<8x1xf32>
    %164 = vector.broadcast %156 : vector<8x1xf32> to vector<8x32xf32>
    %165 = arith.subf %152, %164 : vector<8x32xf32>
    %cst_85 = arith.constant 9.99999974E-6 : f32
    %166 = vector.broadcast %cst_85 : f32 to vector<8x1xf32>
    %167 = arith.addf %163, %166 : vector<8x1xf32>
    %168 = math.rsqrt %167 : vector<8x1xf32>
    %169 = vector.broadcast %168 : vector<8x1xf32> to vector<8x32xf32>
    %170 = arith.mulf %165, %169 : vector<8x32xf32>
    %c0_86 = arith.constant 0 : index
    %c0_87 = arith.constant 0 : index
    %171 = vector.load %arg9[%c0_86, %c0_87] : memref<1x32xf32, #tpu.memory_space<vmem>>, vector<1x32xf32>
    %172 = vector.shape_cast %171 : vector<1x32xf32> to vector<32xf32>
    %173 = vector.shape_cast %172 : vector<32xf32> to vector<1x32xf32>
    %174 = vector.broadcast %173 : vector<1x32xf32> to vector<8x32xf32>
    %175 = arith.mulf %170, %174 : vector<8x32xf32>
    %c0_88 = arith.constant 0 : index
    %c0_89 = arith.constant 0 : index
    %176 = vector.load %arg10[%c0_88, %c0_89] : memref<1x32xf32, #tpu.memory_space<vmem>>, vector<1x32xf32>
    %177 = vector.shape_cast %176 : vector<1x32xf32> to vector<32xf32>
    %178 = vector.shape_cast %177 : vector<32xf32> to vector<1x32xf32>
    %179 = vector.broadcast %178 : vector<1x32xf32> to vector<8x32xf32>
    %180 = arith.addf %175, %179 : vector<8x32xf32>
    %181 = arith.truncf %180 : vector<8x32xf32> to vector<8x32xbf16>
    %c0_90 = arith.constant 0 : index
    %c0_91 = arith.constant 0 : index
    %182 = vector.load %arg12[%c0_90, %c0_91] : memref<1x64xf32, #tpu.memory_space<vmem>>, vector<1x64xf32>
    %183 = vector.shape_cast %182 : vector<1x64xf32> to vector<64xf32>
    %c0_92 = arith.constant 0 : index
    %c0_93 = arith.constant 0 : index
    %184 = vector.load %arg11[%c0_92, %c0_93] : memref<32x64xbf16, #tpu.memory_space<vmem>>, vector<32x64xbf16>
    %cst_94 = arith.constant dense<0.000000e+00> : vector<8x64xf32>
    %185 = tpu.matmul %181, %184, %cst_94 {dimension_numbers = #tpu.dot_dimension_numbers<[1], [0], [0], [1], [0, 0, 1, 1], [], []>} : vector<8x32xbf16>, vector<32x64xbf16>, vector<8x64xf32> -> vector<8x64xf32>
    %186 = vector.shape_cast %183 : vector<64xf32> to vector<1x64xf32>
    %187 = vector.broadcast %186 : vector<1x64xf32> to vector<8x64xf32>
    %188 = arith.addf %185, %187 : vector<8x64xf32>
    %cst_95 = arith.constant 1.702000e+00 : f32
    %189 = vector.broadcast %cst_95 : f32 to vector<8x64xf32>
    %190 = arith.mulf %189, %188 : vector<8x64xf32>
    %191 = arith.negf %190 : vector<8x64xf32>
    %192 = math.exp %191 : vector<8x64xf32>
    %cst_96 = arith.constant 1.000000e+00 : f32
    %193 = vector.broadcast %cst_96 : f32 to vector<8x64xf32>
    %194 = arith.addf %193, %192 : vector<8x64xf32>
    %195 = arith.divf %193, %194 : vector<8x64xf32>
    %196 = arith.mulf %188, %195 : vector<8x64xf32>
    %197 = arith.truncf %196 : vector<8x64xf32> to vector<8x64xbf16>
    %c0_97 = arith.constant 0 : index
    %c0_98 = arith.constant 0 : index
    %198 = vector.load %arg13[%c0_97, %c0_98] : memref<64x32xbf16, #tpu.memory_space<vmem>>, vector<64x32xbf16>
    %cst_99 = arith.constant dense<0.000000e+00> : vector<8x32xf32>
    %199 = tpu.matmul %197, %198, %cst_99 {dimension_numbers = #tpu.dot_dimension_numbers<[1], [0], [0], [1], [0, 0, 1, 1], [], []>} : vector<8x64xbf16>, vector<64x32xbf16>, vector<8x32xf32> -> vector<8x32xf32>
    %c0_100 = arith.constant 0 : index
    %c0_101 = arith.constant 0 : index
    %200 = vector.load %arg14[%c0_100, %c0_101] : memref<1x32xf32, #tpu.memory_space<vmem>>, vector<1x32xf32>
    %201 = vector.shape_cast %200 : vector<1x32xf32> to vector<32xf32>
    %202 = vector.shape_cast %201 : vector<32xf32> to vector<1x32xf32>
    %203 = vector.broadcast %202 : vector<1x32xf32> to vector<8x32xf32>
    %204 = arith.addf %199, %203 : vector<8x32xf32>
    %205 = arith.addf %152, %204 : vector<8x32xf32>
    %c0_102 = arith.constant 0 : index
    %c0_103 = arith.constant 0 : index
    %c0_104 = arith.constant 0 : index
    %206 = vector.load %arg15[%c0_102, %c0_103, %c0_104] : memref<1x8x32xf32, #tpu.memory_space<vmem>>, vector<1x8x32xf32>
    %207 = vector.shape_cast %206 : vector<1x8x32xf32> to vector<8x32xf32>
    %208 = vector.shape_cast %205 : vector<8x32xf32> to vector<1x8x32xf32>
    tpu.vector_store %arg15[%c0_102, %c0_103, %c0_104], %208 {strides = array<i32>} : memref<1x8x32xf32, #tpu.memory_space<vmem>>, vector<1x8x32xf32>,
    return
  }
  func.func @transform_0(%arg0: i32) -> (i32, i32, i32) {
    %c0_i32 = arith.constant 0 : i32
    %c0_i32_0 = arith.constant 0 : i32
    %c0_i32_1 = arith.constant 0 : i32
    return %arg0, %c0_i32, %c0_i32_0 : i32, i32, i32
  }
  func.func @transform_1(%arg0: i32) -> (i32, i32, i32, i32) {
    %c0_i32 = arith.constant 0 : i32
    %c0_i32_0 = arith.constant 0 : i32
    %c0_i32_1 = arith.constant 0 : i32
    %c0_i32_2 = arith.constant 0 : i32
    return %arg0, %c0_i32, %c0_i32_0, %c0_i32_1 : i32, i32, i32, i32
  }
  func.func @transform_2(%arg0: i32) -> (i32, i32) {
    %c0_i32 = arith.constant 0 : i32
    %c0_i32_0 = arith.constant 0 : i32
    %c0_i32_1 = arith.constant 0 : i32
    return %c0_i32, %c0_i32_0 : i32, i32
  }
  func.func @transform_3(%arg0: i32) -> (i32, i32) {
    %c0_i32 = arith.constant 0 : i32
    %c0_i32_0 = arith.constant 0 : i32
    %c0_i32_1 = arith.constant 0 : i32
    return %c0_i32, %c0_i32_0 : i32, i32
  }
  func.func @transform_4(%arg0: i32) -> (i32, i32) {
    %c0_i32 = arith.constant 0 : i32
    %c0_i32_0 = arith.constant 0 : i32
    %c0_i32_1 = arith.constant 0 : i32
    return %c0_i32, %c0_i32_0 : i32, i32
  }
  func.func @transform_5(%arg0: i32) -> (i32, i32) {
    %c0_i32 = arith.constant 0 : i32
    %c0_i32_0 = arith.constant 0 : i32
    %c0_i32_1 = arith.constant 0 : i32
    return %c0_i32, %c0_i32_0 : i32, i32
  }
  func.func @transform_6(%arg0: i32) -> (i32, i32) {
    %c0_i32 = arith.constant 0 : i32
    %c0_i32_0 = arith.constant 0 : i32
    %c0_i32_1 = arith.constant 0 : i32
    return %c0_i32, %c0_i32_0 : i32, i32
  }
  func.func @transform_7(%arg0: i32) -> (i32, i32) {
    %c0_i32 = arith.constant 0 : i32
    %c0_i32_0 = arith.constant 0 : i32
    %c0_i32_1 = arith.constant 0 : i32
    return %c0_i32, %c0_i32_0 : i32, i32
  }
  func.func @transform_8(%arg0: i32) -> (i32, i32) {
    %c0_i32 = arith.constant 0 : i32
    %c0_i32_0 = arith.constant 0 : i32
    %c0_i32_1 = arith.constant 0 : i32
    return %c0_i32, %c0_i32_0 : i32, i32
  }
  func.func @transform_9(%arg0: i32) -> (i32, i32) {
    %c0_i32 = arith.constant 0 : i32
    %c0_i32_0 = arith.constant 0 : i32
    %c0_i32_1 = arith.constant 0 : i32
    return %c0_i32, %c0_i32_0 : i32, i32
  }
  func.func @transform_10(%arg0: i32) -> (i32, i32) {
    %c0_i32 = arith.constant 0 : i32
    %c0_i32_0 = arith.constant 0 : i32
    %c0_i32_1 = arith.constant 0 : i32
    return %c0_i32, %c0_i32_0 : i32, i32
  }
  func.func @transform_11(%arg0: i32) -> (i32, i32) {
    %c0_i32 = arith.constant 0 : i32
    %c0_i32_0 = arith.constant 0 : i32
    %c0_i32_1 = arith.constant 0 : i32
    return %c0_i32, %c0_i32_0 : i32, i32
  }
  func.func @transform_12(%arg0: i32) -> (i32, i32) {
    %c0_i32 = arith.constant 0 : i32
    %c0_i32_0 = arith.constant 0 : i32
    %c0_i32_1 = arith.constant 0 : i32
    return %c0_i32, %c0_i32_0 : i32, i32
  }
  func.func @transform_13(%arg0: i32) -> (i32, i32) {
    %c0_i32 = arith.constant 0 : i32
    %c0_i32_0 = arith.constant 0 : i32
    %c0_i32_1 = arith.constant 0 : i32
    return %c0_i32, %c0_i32_0 : i32, i32
  }
  func.func @transform_14(%arg0: i32) -> (i32, i32, i32) {
    %c0_i32 = arith.constant 0 : i32
    %c0_i32_0 = arith.constant 0 : i32
    %c0_i32_1 = arith.constant 0 : i32
    return %arg0, %c0_i32, %c0_i32_0 : i32, i32, i32
  }
}

module attributes {stable_mosaic.version = 11 : i64} {
  func.func @_clip_layer_kernel(%arg0: i32, %arg1: memref<1x8x32xf32, #tpu.memory_space<vmem>>, %arg2: memref<1x1x8x8xf32, #tpu.memory_space<vmem>>, %arg3: memref<1x32xf32, #tpu.memory_space<vmem>>, %arg4: memref<1x32xf32, #tpu.memory_space<vmem>>, %arg5: memref<32x96xbf16, #tpu.memory_space<vmem>>, %arg6: memref<1x96xf32, #tpu.memory_space<vmem>>, %arg7: memref<32x32xbf16, #tpu.memory_space<vmem>>, %arg8: memref<1x32xf32, #tpu.memory_space<vmem>>, %arg9: memref<1x32xf32, #tpu.memory_space<vmem>>, %arg10: memref<1x32xf32, #tpu.memory_space<vmem>>, %arg11: memref<32x64xbf16, #tpu.memory_space<vmem>>, %arg12: memref<1x64xf32, #tpu.memory_space<vmem>>, %arg13: memref<64x32xbf16, #tpu.memory_space<vmem>>, %arg14: memref<1x32xf32, #tpu.memory_space<vmem>>, %arg15: memref<1x8x32xf32, #tpu.memory_space<vmem>>, %arg16: memref<4x8x8xbf16, #tpu.memory_space<vmem>>, %arg17: memref<4x8x8xbf16, #tpu.memory_space<vmem>>, %arg18: memref<4x8x8xbf16, #tpu.memory_space<vmem>>, %arg19: memref<8x32xbf16, #tpu.memory_space<vmem>>) attributes {dimension_semantics = [#tpu.dimension_semantics<parallel>], iteration_bounds = array<i64: 2>, scalar_prefetch = 0 : i64, scratch_operands = 4 : i64, tpu.core_type = #tpu.core_type<tc>, window_params = [{transform_indices = @transform_0, window_bounds = array<i64: 1, 8, 32>}, {transform_indices = @transform_1, window_bounds = array<i64: 1, 1, 8, 8>}, {pipeline_mode = #tpu.pipeline_mode<synchronous>, transform_indices = @transform_2, window_bounds = array<i64: 1, 32>}, {pipeline_mode = #tpu.pipeline_mode<synchronous>, transform_indices = @transform_3, window_bounds = array<i64: 1, 32>}, {pipeline_mode = #tpu.pipeline_mode<synchronous>, transform_indices = @transform_4, window_bounds = array<i64: 32, 96>}, {pipeline_mode = #tpu.pipeline_mode<synchronous>, transform_indices = @transform_5, window_bounds = array<i64: 1, 96>}, {pipeline_mode = #tpu.pipeline_mode<synchronous>, transform_indices = @transform_6, window_bounds = array<i64: 32, 32>}, {pipeline_mode = #tpu.pipeline_mode<synchronous>, transform_indices = @transform_7, window_bounds = array<i64: 1, 32>}, {pipeline_mode = #tpu.pipeline_mode<synchronous>, transform_indices = @transform_8, window_bounds = array<i64: 1, 32>}, {pipeline_mode = #tpu.pipeline_mode<synchronous>, transform_indices = @transform_9, window_bounds = array<i64: 1, 32>}, {pipeline_mode = #tpu.pipeline_mode<synchronous>, transform_indices = @transform_10, window_bounds = array<i64: 32, 64>}, {pipeline_mode = #tpu.pipeline_mode<synchronous>, transform_indices = @transform_11, window_bounds = array<i64: 1, 64>}, {pipeline_mode = #tpu.pipeline_mode<synchronous>, transform_indices = @transform_12, window_bounds = array<i64: 64, 32>}, {pipeline_mode = #tpu.pipeline_mode<synchronous>, transform_indices = @transform_13, window_bounds = array<i64: 1, 32>}, {transform_indices = @transform_14, window_bounds = array<i64: 1, 8, 32>}]} {
    %c0 = arith.constant 0 : index
    %c0_0 = arith.constant 0 : index
    %c0_1 = arith.constant 0 : index
    %0 = vector.load %arg1[%c0, %c0_0, %c0_1] : memref<1x8x32xf32, #tpu.memory_space<vmem>>, vector<1x8x32xf32>
    %1 = vector.shape_cast %0 : vector<1x8x32xf32> to vector<8x32xf32>
    %cst = arith.constant dense<0.000000e+00> : vector<8xf32>
    %2 = vector.multi_reduction <add>, %1, %cst [1] : vector<8x32xf32> to vector<8xf32>
    %3 = vector.shape_cast %2 : vector<8xf32> to vector<8x1xf32>
    %cst_2 = arith.constant 3.200000e+01 : f32
    %4 = vector.broadcast %cst_2 : f32 to vector<8x1xf32>
    %5 = arith.divf %3, %4 : vector<8x1xf32>
    %6 = vector.broadcast %5 : vector<8x1xf32> to vector<8x32xf32>
    %7 = arith.subf %1, %6 : vector<8x32xf32>
    %8 = arith.mulf %7, %7 : vector<8x32xf32>
    %cst_3 = arith.constant dense<0.000000e+00> : vector<8xf32>
    %9 = vector.multi_reduction <add>, %8, %cst_3 [1] : vector<8x32xf32> to vector<8xf32>
    %10 = vector.shape_cast %9 : vector<8xf32> to vector<8x1xf32>
    %cst_4 = arith.constant 3.200000e+01 : f32
    %11 = vector.broadcast %cst_4 : f32 to vector<8x1xf32>
    %12 = arith.divf %10, %11 : vector<8x1xf32>
    %13 = vector.broadcast %5 : vector<8x1xf32> to vector<8x32xf32>
    %14 = arith.subf %1, %13 : vector<8x32xf32>
    %cst_5 = arith.constant 9.99999974E-6 : f32
    %15 = vector.broadcast %cst_5 : f32 to vector<8x1xf32>
    %16 = arith.addf %12, %15 : vector<8x1xf32>
    %17 = math.rsqrt %16 : vector<8x1xf32>
    %18 = vector.broadcast %17 : vector<8x1xf32> to vector<8x32xf32>
    %19 = arith.mulf %14, %18 : vector<8x32xf32>
    %c0_6 = arith.constant 0 : index
    %c0_7 = arith.constant 0 : index
    %20 = vector.load %arg3[%c0_6, %c0_7] : memref<1x32xf32, #tpu.memory_space<vmem>>, vector<1x32xf32>
    %21 = vector.shape_cast %20 : vector<1x32xf32> to vector<32xf32>
    %22 = vector.shape_cast %21 : vector<32xf32> to vector<1x32xf32>
    %23 = vector.broadcast %22 : vector<1x32xf32> to vector<8x32xf32>
    %24 = arith.mulf %19, %23 : vector<8x32xf32>
    %c0_8 = arith.constant 0 : index
    %c0_9 = arith.constant 0 : index
    %25 = vector.load %arg4[%c0_8, %c0_9] : memref<1x32xf32, #tpu.memory_space<vmem>>, vector<1x32xf32>
    %26 = vector.shape_cast %25 : vector<1x32xf32> to vector<32xf32>
    %27 = vector.shape_cast %26 : vector<32xf32> to vector<1x32xf32>
    %28 = vector.broadcast %27 : vector<1x32xf32> to vector<8x32xf32>
    %29 = arith.addf %24, %28 : vector<8x32xf32>
    %30 = arith.truncf %29 : vector<8x32xf32> to vector<8x32xbf16>
    %c0_10 = arith.constant 0 : index
    %c0_11 = arith.constant 0 : index
    %31 = vector.load %arg5[%c0_10, %c0_11] : memref<32x96xbf16, #tpu.memory_space<vmem>>, vector<32x96xbf16>
    %cst_12 = arith.constant dense<0.000000e+00> : vector<8x96xf32>
    %32 = tpu.matmul %30, %31, %cst_12 {dimension_numbers = #tpu.dot_dimension_numbers<[1], [0], [0], [1], [0, 0, 1, 1], [], []>} : vector<8x32xbf16>, vector<32x96xbf16>, vector<8x96xf32> -> vector<8x96xf32>
    %c0_13 = arith.constant 0 : index
    %c0_14 = arith.constant 0 : index
    %33 = vector.load %arg6[%c0_13, %c0_14] : memref<1x96xf32, #tpu.memory_space<vmem>>, vector<1x96xf32>
    %34 = vector.shape_cast %33 : vector<1x96xf32> to vector<96xf32>
    %35 = vector.shape_cast %34 : vector<96xf32> to vector<1x96xf32>
    %36 = vector.broadcast %35 : vector<1x96xf32> to vector<8x96xf32>
    %37 = arith.addf %32, %36 : vector<8x96xf32>
    %38 = vector.extract_strided_slice %37 {offsets = [0, 0], sizes = [8, 8], strides = [1, 1]} : vector<8x96xf32> to vector<8x8xf32>
    %cst_15 = arith.constant 0.353553385 : f32
    %39 = vector.broadcast %cst_15 : f32 to vector<8x8xf32>
    %40 = arith.mulf %38, %39 : vector<8x8xf32>
    %41 = arith.truncf %40 : vector<8x8xf32> to vector<8x8xbf16>
    %c0_16 = arith.constant 0 : index
    %c0_17 = arith.constant 0 : index
    %c0_18 = arith.constant 0 : index
    %42 = vector.load %arg16[%c0_16, %c0_17, %c0_18] : memref<4x8x8xbf16, #tpu.memory_space<vmem>>, vector<1x8x8xbf16>
    %43 = vector.shape_cast %42 : vector<1x8x8xbf16> to vector<8x8xbf16>
    %44 = vector.shape_cast %41 : vector<8x8xbf16> to vector<1x8x8xbf16>
    tpu.vector_store %arg16[%c0_16, %c0_17, %c0_18], %44 {strides = array<i32>} : memref<4x8x8xbf16, #tpu.memory_space<vmem>>, vector<1x8x8xbf16>,
    %45 = vector.extract_strided_slice %37 {offsets = [0, 32], sizes = [8, 8], strides = [1, 1]} : vector<8x96xf32> to vector<8x8xf32>
    %46 = arith.truncf %45 : vector<8x8xf32> to vector<8x8xbf16>
    %c0_19 = arith.constant 0 : index
    %c0_20 = arith.constant 0 : index
    %c0_21 = arith.constant 0 : index
    %47 = vector.load %arg17[%c0_19, %c0_20, %c0_21] : memref<4x8x8xbf16, #tpu.memory_space<vmem>>, vector<1x8x8xbf16>
    %48 = vector.shape_cast %47 : vector<1x8x8xbf16> to vector<8x8xbf16>
    %49 = vector.shape_cast %46 : vector<8x8xbf16> to vector<1x8x8xbf16>
    tpu.vector_store %arg17[%c0_19, %c0_20, %c0_21], %49 {strides = array<i32>} : memref<4x8x8xbf16, #tpu.memory_space<vmem>>, vector<1x8x8xbf16>,
    %50 = vector.extract_strided_slice %37 {offsets = [0, 64], sizes = [8, 8], strides = [1, 1]} : vector<8x96xf32> to vector<8x8xf32>
    %51 = arith.truncf %50 : vector<8x8xf32> to vector<8x8xbf16>
    %c0_22 = arith.constant 0 : index
    %c0_23 = arith.constant 0 : index
    %c0_24 = arith.constant 0 : index
    %52 = vector.load %arg18[%c0_22, %c0_23, %c0_24] : memref<4x8x8xbf16, #tpu.memory_space<vmem>>, vector<1x8x8xbf16>
    %53 = vector.shape_cast %52 : vector<1x8x8xbf16> to vector<8x8xbf16>
    %54 = vector.shape_cast %51 : vector<8x8xbf16> to vector<1x8x8xbf16>
    tpu.vector_store %arg18[%c0_22, %c0_23, %c0_24], %54 {strides = array<i32>} : memref<4x8x8xbf16, #tpu.memory_space<vmem>>, vector<1x8x8xbf16>,
    %55 = vector.extract_strided_slice %37 {offsets = [0, 8], sizes = [8, 8], strides = [1, 1]} : vector<8x96xf32> to vector<8x8xf32>
    %cst_25 = arith.constant 0.353553385 : f32
    %56 = vector.broadcast %cst_25 : f32 to vector<8x8xf32>
    %57 = arith.mulf %55, %56 : vector<8x8xf32>
    %58 = arith.truncf %57 : vector<8x8xf32> to vector<8x8xbf16>
    %c1 = arith.constant 1 : index
    %c0_26 = arith.constant 0 : index
    %c0_27 = arith.constant 0 : index
    %59 = vector.load %arg16[%c1, %c0_26, %c0_27] : memref<4x8x8xbf16, #tpu.memory_space<vmem>>, vector<1x8x8xbf16>
    %60 = vector.shape_cast %59 : vector<1x8x8xbf16> to vector<8x8xbf16>
    %61 = vector.shape_cast %58 : vector<8x8xbf16> to vector<1x8x8xbf16>
    tpu.vector_store %arg16[%c1, %c0_26, %c0_27], %61 {strides = array<i32>} : memref<4x8x8xbf16, #tpu.memory_space<vmem>>, vector<1x8x8xbf16>,
    %62 = vector.extract_strided_slice %37 {offsets = [0, 40], sizes = [8, 8], strides = [1, 1]} : vector<8x96xf32> to vector<8x8xf32>
    %63 = arith.truncf %62 : vector<8x8xf32> to vector<8x8xbf16>
    %c1_28 = arith.constant 1 : index
    %c0_29 = arith.constant 0 : index
    %c0_30 = arith.constant 0 : index
    %64 = vector.load %arg17[%c1_28, %c0_29, %c0_30] : memref<4x8x8xbf16, #tpu.memory_space<vmem>>, vector<1x8x8xbf16>
    %65 = vector.shape_cast %64 : vector<1x8x8xbf16> to vector<8x8xbf16>
    %66 = vector.shape_cast %63 : vector<8x8xbf16> to vector<1x8x8xbf16>
    tpu.vector_store %arg17[%c1_28, %c0_29, %c0_30], %66 {strides = array<i32>} : memref<4x8x8xbf16, #tpu.memory_space<vmem>>, vector<1x8x8xbf16>,
    %67 = vector.extract_strided_slice %37 {offsets = [0, 72], sizes = [8, 8], strides = [1, 1]} : vector<8x96xf32> to vector<8x8xf32>
    %68 = arith.truncf %67 : vector<8x8xf32> to vector<8x8xbf16>
    %c1_31 = arith.constant 1 : index
    %c0_32 = arith.constant 0 : index
    %c0_33 = arith.constant 0 : index
    %69 = vector.load %arg18[%c1_31, %c0_32, %c0_33] : memref<4x8x8xbf16, #tpu.memory_space<vmem>>, vector<1x8x8xbf16>
    %70 = vector.shape_cast %69 : vector<1x8x8xbf16> to vector<8x8xbf16>
    %71 = vector.shape_cast %68 : vector<8x8xbf16> to vector<1x8x8xbf16>
    tpu.vector_store %arg18[%c1_31, %c0_32, %c0_33], %71 {strides = array<i32>} : memref<4x8x8xbf16, #tpu.memory_space<vmem>>, vector<1x8x8xbf16>,
    %72 = vector.extract_strided_slice %37 {offsets = [0, 16], sizes = [8, 8], strides = [1, 1]} : vector<8x96xf32> to vector<8x8xf32>
    %cst_34 = arith.constant 0.353553385 : f32
    %73 = vector.broadcast %cst_34 : f32 to vector<8x8xf32>
    %74 = arith.mulf %72, %73 : vector<8x8xf32>
    %75 = arith.truncf %74 : vector<8x8xf32> to vector<8x8xbf16>
    %c2 = arith.constant 2 : index
    %c0_35 = arith.constant 0 : index
    %c0_36 = arith.constant 0 : index
    %76 = vector.load %arg16[%c2, %c0_35, %c0_36] : memref<4x8x8xbf16, #tpu.memory_space<vmem>>, vector<1x8x8xbf16>
    %77 = vector.shape_cast %76 : vector<1x8x8xbf16> to vector<8x8xbf16>
    %78 = vector.shape_cast %75 : vector<8x8xbf16> to vector<1x8x8xbf16>
    tpu.vector_store %arg16[%c2, %c0_35, %c0_36], %78 {strides = array<i32>} : memref<4x8x8xbf16, #tpu.memory_space<vmem>>, vector<1x8x8xbf16>,
    %79 = vector.extract_strided_slice %37 {offsets = [0, 48], sizes = [8, 8], strides = [1, 1]} : vector<8x96xf32> to vector<8x8xf32>
    %80 = arith.truncf %79 : vector<8x8xf32> to vector<8x8xbf16>
    %c2_37 = arith.constant 2 : index
    %c0_38 = arith.constant 0 : index
    %c0_39 = arith.constant 0 : index
    %81 = vector.load %arg17[%c2_37, %c0_38, %c0_39] : memref<4x8x8xbf16, #tpu.memory_space<vmem>>, vector<1x8x8xbf16>
    %82 = vector.shape_cast %81 : vector<1x8x8xbf16> to vector<8x8xbf16>
    %83 = vector.shape_cast %80 : vector<8x8xbf16> to vector<1x8x8xbf16>
    tpu.vector_store %arg17[%c2_37, %c0_38, %c0_39], %83 {strides = array<i32>} : memref<4x8x8xbf16, #tpu.memory_space<vmem>>, vector<1x8x8xbf16>,
    %84 = vector.extract_strided_slice %37 {offsets = [0, 80], sizes = [8, 8], strides = [1, 1]} : vector<8x96xf32> to vector<8x8xf32>
    %85 = arith.truncf %84 : vector<8x8xf32> to vector<8x8xbf16>
    %c2_40 = arith.constant 2 : index
    %c0_41 = arith.constant 0 : index
    %c0_42 = arith.constant 0 : index
    %86 = vector.load %arg18[%c2_40, %c0_41, %c0_42] : memref<4x8x8xbf16, #tpu.memory_space<vmem>>, vector<1x8x8xbf16>
    %87 = vector.shape_cast %86 : vector<1x8x8xbf16> to vector<8x8xbf16>
    %88 = vector.shape_cast %85 : vector<8x8xbf16> to vector<1x8x8xbf16>
    tpu.vector_store %arg18[%c2_40, %c0_41, %c0_42], %88 {strides = array<i32>} : memref<4x8x8xbf16, #tpu.memory_space<vmem>>, vector<1x8x8xbf16>,
    %89 = vector.extract_strided_slice %37 {offsets = [0, 24], sizes = [8, 8], strides = [1, 1]} : vector<8x96xf32> to vector<8x8xf32>
    %cst_43 = arith.constant 0.353553385 : f32
    %90 = vector.broadcast %cst_43 : f32 to vector<8x8xf32>
    %91 = arith.mulf %89, %90 : vector<8x8xf32>
    %92 = arith.truncf %91 : vector<8x8xf32> to vector<8x8xbf16>
    %c3 = arith.constant 3 : index
    %c0_44 = arith.constant 0 : index
    %c0_45 = arith.constant 0 : index
    %93 = vector.load %arg16[%c3, %c0_44, %c0_45] : memref<4x8x8xbf16, #tpu.memory_space<vmem>>, vector<1x8x8xbf16>
    %94 = vector.shape_cast %93 : vector<1x8x8xbf16> to vector<8x8xbf16>
    %95 = vector.shape_cast %92 : vector<8x8xbf16> to vector<1x8x8xbf16>
    tpu.vector_store %arg16[%c3, %c0_44, %c0_45], %95 {strides = array<i32>} : memref<4x8x8xbf16, #tpu.memory_space<vmem>>, vector<1x8x8xbf16>,
    %96 = vector.extract_strided_slice %37 {offsets = [0, 56], sizes = [8, 8], strides = [1, 1]} : vector<8x96xf32> to vector<8x8xf32>
    %97 = arith.truncf %96 : vector<8x8xf32> to vector<8x8xbf16>
    %c3_46 = arith.constant 3 : index
    %c0_47 = arith.constant 0 : index
    %c0_48 = arith.constant 0 : index
    %98 = vector.load %arg17[%c3_46, %c0_47, %c0_48] : memref<4x8x8xbf16, #tpu.memory_space<vmem>>, vector<1x8x8xbf16>
    %99 = vector.shape_cast %98 : vector<1x8x8xbf16> to vector<8x8xbf16>
    %100 = vector.shape_cast %97 : vector<8x8xbf16> to vector<1x8x8xbf16>
    tpu.vector_store %arg17[%c3_46, %c0_47, %c0_48], %100 {strides = array<i32>} : memref<4x8x8xbf16, #tpu.memory_space<vmem>>, vector<1x8x8xbf16>,
    %101 = vector.extract_strided_slice %37 {offsets = [0, 88], sizes = [8, 8], strides = [1, 1]} : vector<8x96xf32> to vector<8x8xf32>
    %102 = arith.truncf %101 : vector<8x8xf32> to vector<8x8xbf16>
    %c3_49 = arith.constant 3 : index
    %c0_50 = arith.constant 0 : index
    %c0_51 = arith.constant 0 : index
    %103 = vector.load %arg18[%c3_49, %c0_50, %c0_51] : memref<4x8x8xbf16, #tpu.memory_space<vmem>>, vector<1x8x8xbf16>
    %104 = vector.shape_cast %103 : vector<1x8x8xbf16> to vector<8x8xbf16>
    %105 = vector.shape_cast %102 : vector<8x8xbf16> to vector<1x8x8xbf16>
    tpu.vector_store %arg18[%c3_49, %c0_50, %c0_51], %105 {strides = array<i32>} : memref<4x8x8xbf16, #tpu.memory_space<vmem>>, vector<1x8x8xbf16>,
    %c0_52 = arith.constant 0 : index
    %c0_53 = arith.constant 0 : index
    %c0_54 = arith.constant 0 : index
    %106 = vector.load %arg16[%c0_52, %c0_53, %c0_54] : memref<4x8x8xbf16, #tpu.memory_space<vmem>>, vector<4x8x8xbf16>
    %c0_55 = arith.constant 0 : index
    %c0_56 = arith.constant 0 : index
    %c0_57 = arith.constant 0 : index
    %107 = vector.load %arg17[%c0_55, %c0_56, %c0_57] : memref<4x8x8xbf16, #tpu.memory_space<vmem>>, vector<4x8x8xbf16>
    "tpu.trace_start"() <{level = 10 : i32, message = "hqd,hkd->hqk"}> : () -> ()
    %cst_58 = arith.constant dense<0.000000e+00> : vector<4x8x8xf32>
    %108 = tpu.matmul %106, %107, %cst_58 {dimension_numbers = #tpu.dot_dimension_numbers<[2], [2], [1], [1], [0, 0, 0, 1, 1, 1], [0], [0]>} : vector<4x8x8xbf16>, vector<4x8x8xbf16>, vector<4x8x8xf32> -> vector<4x8x8xf32>
    "tpu.trace_stop"() : () -> ()
    %c0_59 = arith.constant 0 : index
    %c0_60 = arith.constant 0 : index
    %c0_61 = arith.constant 0 : index
    %c0_62 = arith.constant 0 : index
    %109 = vector.load %arg2[%c0_59, %c0_60, %c0_61, %c0_62] : memref<1x1x8x8xf32, #tpu.memory_space<vmem>>, vector<1x1x8x8xf32>
    %110 = vector.shape_cast %109 : vector<1x1x8x8xf32> to vector<8x8xf32>
    %111 = vector.shape_cast %110 : vector<8x8xf32> to vector<1x8x8xf32>
    %112 = vector.broadcast %111 : vector<1x8x8xf32> to vector<4x8x8xf32>
    %113 = arith.addf %108, %112 : vector<4x8x8xf32>
    %cst_63 = arith.constant dense<0xFF800000> : vector<4x8xf32>
    %114 = vector.multi_reduction <maximumf>, %113, %cst_63 [2] : vector<4x8x8xf32> to vector<4x8xf32>
    %115 = vector.shape_cast %114 : vector<4x8xf32> to vector<4x8x1xf32>
    %116 = vector.broadcast %115 : vector<4x8x1xf32> to vector<4x8x8xf32>
    %117 = arith.subf %113, %116 : vector<4x8x8xf32>
    %118 = math.exp %117 : vector<4x8x8xf32>
    %cst_64 = arith.constant dense<0.000000e+00> : vector<4x8xf32>
    %119 = vector.multi_reduction <add>, %118, %cst_64 [2] : vector<4x8x8xf32> to vector<4x8xf32>
    %120 = vector.shape_cast %119 : vector<4x8xf32> to vector<4x8x1xf32>
    %121 = tpu.reciprocal %120 {approx = true} : vector<4x8x1xf32> -> vector<4x8x1xf32>
    %122 = arith.truncf %118 : vector<4x8x8xf32> to vector<4x8x8xbf16>
    %123 = arith.truncf %121 : vector<4x8x1xf32> to vector<4x8x1xbf16>
    %124 = vector.broadcast %123 : vector<4x8x1xbf16> to vector<4x8x8xbf16>
    %125 = arith.mulf %122, %124 : vector<4x8x8xbf16>
    %c0_65 = arith.constant 0 : index
    %c0_66 = arith.constant 0 : index
    %c0_67 = arith.constant 0 : index
    %126 = vector.load %arg18[%c0_65, %c0_66, %c0_67] : memref<4x8x8xbf16, #tpu.memory_space<vmem>>, vector<4x8x8xbf16>
    "tpu.trace_start"() <{level = 10 : i32, message = "hqk,hkd->hqd"}> : () -> ()
    %cst_68 = arith.constant dense<0.000000e+00> : vector<4x8x8xf32>
    %127 = tpu.matmul %125, %126, %cst_68 {dimension_numbers = #tpu.dot_dimension_numbers<[2], [1], [1], [2], [0, 0, 0, 1, 1, 2], [0], [0]>} : vector<4x8x8xbf16>, vector<4x8x8xbf16>, vector<4x8x8xf32> -> vector<4x8x8xf32>
    "tpu.trace_stop"() : () -> ()
    %128 = vector.extract_strided_slice %127 {offsets = [0, 0, 0], sizes = [1, 8, 8], strides = [1, 1, 1]} : vector<4x8x8xf32> to vector<1x8x8xf32>
    %129 = vector.shape_cast %128 : vector<1x8x8xf32> to vector<8x8xf32>
    %130 = arith.truncf %129 : vector<8x8xf32> to vector<8x8xbf16>
    %c0_69 = arith.constant 0 : index
    %c0_70 = arith.constant 0 : index
    %131 = vector.load %arg19[%c0_69, %c0_70] : memref<8x32xbf16, #tpu.memory_space<vmem>>, vector<8x8xbf16>
    tpu.vector_store %arg19[%c0_69, %c0_70], %130 {strides = array<i32>} : memref<8x32xbf16, #tpu.memory_space<vmem>>, vector<8x8xbf16>,
    %132 = vector.extract_strided_slice %127 {offsets = [1, 0, 0], sizes = [1, 8, 8], strides = [1, 1, 1]} : vector<4x8x8xf32> to vector<1x8x8xf32>
    %133 = vector.shape_cast %132 : vector<1x8x8xf32> to vector<8x8xf32>
    %134 = arith.truncf %133 : vector<8x8xf32> to vector<8x8xbf16>
    %c0_71 = arith.constant 0 : index
    %c8 = arith.constant 8 : index
    %135 = vector.load %arg19[%c0_71, %c8] : memref<8x32xbf16, #tpu.memory_space<vmem>>, vector<8x8xbf16>
    tpu.vector_store %arg19[%c0_71, %c8], %134 {strides = array<i32>} : memref<8x32xbf16, #tpu.memory_space<vmem>>, vector<8x8xbf16>,
    %136 = vector.extract_strided_slice %127 {offsets = [2, 0, 0], sizes = [1, 8, 8], strides = [1, 1, 1]} : vector<4x8x8xf32> to vector<1x8x8xf32>
    %137 = vector.shape_cast %136 : vector<1x8x8xf32> to vector<8x8xf32>
    %138 = arith.truncf %137 : vector<8x8xf32> to vector<8x8xbf16>
    %c0_72 = arith.constant 0 : index
    %c16 = arith.constant 16 : index
    %139 = vector.load %arg19[%c0_72, %c16] : memref<8x32xbf16, #tpu.memory_space<vmem>>, vector<8x8xbf16>
    tpu.vector_store %arg19[%c0_72, %c16], %138 {strides = array<i32>} : memref<8x32xbf16, #tpu.memory_space<vmem>>, vector<8x8xbf16>,
    %140 = vector.extract_strided_slice %127 {offsets = [3, 0, 0], sizes = [1, 8, 8], strides = [1, 1, 1]} : vector<4x8x8xf32> to vector<1x8x8xf32>
    %141 = vector.shape_cast %140 : vector<1x8x8xf32> to vector<8x8xf32>
    %142 = arith.truncf %141 : vector<8x8xf32> to vector<8x8xbf16>
    %c0_73 = arith.constant 0 : index
    %c24 = arith.constant 24 : index
    %143 = vector.load %arg19[%c0_73, %c24] : memref<8x32xbf16, #tpu.memory_space<vmem>>, vector<8x8xbf16>
    tpu.vector_store %arg19[%c0_73, %c24], %142 {strides = array<i32>} : memref<8x32xbf16, #tpu.memory_space<vmem>>, vector<8x8xbf16>,
    %c0_74 = arith.constant 0 : index
    %c0_75 = arith.constant 0 : index
    %144 = vector.load %arg19[%c0_74, %c0_75] : memref<8x32xbf16, #tpu.memory_space<vmem>>, vector<8x32xbf16>
    %c0_76 = arith.constant 0 : index
    %c0_77 = arith.constant 0 : index
    %145 = vector.load %arg7[%c0_76, %c0_77] : memref<32x32xbf16, #tpu.memory_space<vmem>>, vector<32x32xbf16>
    %cst_78 = arith.constant dense<0.000000e+00> : vector<8x32xf32>
    %146 = tpu.matmul %144, %145, %cst_78 {dimension_numbers = #tpu.dot_dimension_numbers<[1], [0], [0], [1], [0, 0, 1, 1], [], []>} : vector<8x32xbf16>, vector<32x32xbf16>, vector<8x32xf32> -> vector<8x32xf32>
    %c0_79 = arith.constant 0 : index
    %c0_80 = arith.constant 0 : index
    %147 = vector.load %arg8[%c0_79, %c0_80] : memref<1x32xf32, #tpu.memory_space<vmem>>, vector<1x32xf32>
    %148 = vector.shape_cast %147 : vector<1x32xf32> to vector<32xf32>
    %149 = vector.shape_cast %148 : vector<32xf32> to vector<1x32xf32>
    %150 = vector.broadcast %149 : vector<1x32xf32> to vector<8x32xf32>
    %151 = arith.addf %146, %150 : vector<8x32xf32>
    %152 = arith.addf %1, %151 : vector<8x32xf32>
    %cst_81 = arith.constant dense<0.000000e+00> : vector<8xf32>
    %153 = vector.multi_reduction <add>, %152, %cst_81 [1] : vector<8x32xf32> to vector<8xf32>
    %154 = vector.shape_cast %153 : vector<8xf32> to vector<8x1xf32>
    %cst_82 = arith.constant 3.200000e+01 : f32
    %155 = vector.broadcast %cst_82 : f32 to vector<8x1xf32>
    %156 = arith.divf %154, %155 : vector<8x1xf32>
    %157 = vector.broadcast %156 : vector<8x1xf32> to vector<8x32xf32>
    %158 = arith.subf %152, %157 : vector<8x32xf32>
    %159 = arith.mulf %158, %158 : vector<8x32xf32>
    %cst_83 = arith.constant dense<0.000000e+00> : vector<8xf32>
    %160 = vector.multi_reduction <add>, %159, %cst_83 [1] : vector<8x32xf32> to vector<8xf32>
    %161 = vector.shape_cast %160 : vector<8xf32> to vector<8x1xf32>
    %cst_84 = arith.constant 3.200000e+01 : f32
    %162 = vector.broadcast %cst_84 : f32 to vector<8x1xf32>
    %163 = arith.divf %161, %162 : vector<8x1xf32>
    %164 = vector.broadcast %156 : vector<8x1xf32> to vector<8x32xf32>
    %165 = arith.subf %152, %164 : vector<8x32xf32>
    %cst_85 = arith.constant 9.99999974E-6 : f32
    %166 = vector.broadcast %cst_85 : f32 to vector<8x1xf32>
    %167 = arith.addf %163, %166 : vector<8x1xf32>
    %168 = math.rsqrt %167 : vector<8x1xf32>
    %169 = vector.broadcast %168 : vector<8x1xf32> to vector<8x32xf32>
    %170 = arith.mulf %165, %169 : vector<8x32xf32>
    %c0_86 = arith.constant 0 : index
    %c0_87 = arith.constant 0 : index
    %171 = vector.load %arg9[%c0_86, %c0_87] : memref<1x32xf32, #tpu.memory_space<vmem>>, vector<1x32xf32>
    %172 = vector.shape_cast %171 : vector<1x32xf32> to vector<32xf32>
    %173 = vector.shape_cast %172 : vector<32xf32> to vector<1x32xf32>
    %174 = vector.broadcast %173 : vector<1x32xf32> to vector<8x32xf32>
    %175 = arith.mulf %170, %174 : vector<8x32xf32>
    %c0_88 = arith.constant 0 : index
    %c0_89 = arith.constant 0 : index
    %176 = vector.load %arg10[%c0_88, %c0_89] : memref<1x32xf32, #tpu.memory_space<vmem>>, vector<1x32xf32>
    %177 = vector.shape_cast %176 : vector<1x32xf32> to vector<32xf32>
    %178 = vector.shape_cast %177 : vector<32xf32> to vector<1x32xf32>
    %179 = vector.broadcast %178 : vector<1x32xf32> to vector<8x32xf32>
    %180 = arith.addf %175, %179 : vector<8x32xf32>
    %181 = arith.truncf %180 : vector<8x32xf32> to vector<8x32xbf16>
    %c0_90 = arith.constant 0 : index
    %c0_91 = arith.constant 0 : index
    %182 = vector.load %arg12[%c0_90, %c0_91] : memref<1x64xf32, #tpu.memory_space<vmem>>, vector<1x64xf32>
    %183 = vector.shape_cast %182 : vector<1x64xf32> to vector<64xf32>
    %c0_92 = arith.constant 0 : index
    %c0_93 = arith.constant 0 : index
    %184 = vector.load %arg11[%c0_92, %c0_93] : memref<32x64xbf16, #tpu.memory_space<vmem>>, vector<32x64xbf16>
    %cst_94 = arith.constant dense<0.000000e+00> : vector<8x64xf32>
    %185 = tpu.matmul %181, %184, %cst_94 {dimension_numbers = #tpu.dot_dimension_numbers<[1], [0], [0], [1], [0, 0, 1, 1], [], []>} : vector<8x32xbf16>, vector<32x64xbf16>, vector<8x64xf32> -> vector<8x64xf32>
    %186 = vector.shape_cast %183 : vector<64xf32> to vector<1x64xf32>
    %187 = vector.broadcast %186 : vector<1x64xf32> to vector<8x64xf32>
    %188 = arith.addf %185, %187 : vector<8x64xf32>
    %cst_95 = arith.constant 1.702000e+00 : f32
    %189 = vector.broadcast %cst_95 : f32 to vector<8x64xf32>
    %190 = arith.mulf %189, %188 : vector<8x64xf32>
    %191 = arith.negf %190 : vector<8x64xf32>
    %192 = math.exp %191 : vector<8x64xf32>
    %cst_96 = arith.constant 1.000000e+00 : f32
    %193 = vector.broadcast %cst_96 : f32 to vector<8x64xf32>
    %194 = arith.addf %193, %192 : vector<8x64xf32>
    %195 = arith.divf %193, %194 : vector<8x64xf32>
    %196 = arith.mulf %188, %195 : vector<8x64xf32>
    %197 = arith.truncf %196 : vector<8x64xf32> to vector<8x64xbf16>
    %c0_97 = arith.constant 0 : index
    %c0_98 = arith.constant 0 : index
    %198 = vector.load %arg13[%c0_97, %c0_98] : memref<64x32xbf16, #tpu.memory_space<vmem>>, vector<64x32xbf16>
    %cst_99 = arith.constant dense<0.000000e+00> : vector<8x32xf32>
    %199 = tpu.matmul %197, %198, %cst_99 {dimension_numbers = #tpu.dot_dimension_numbers<[1], [0], [0], [1], [0, 0, 1, 1], [], []>} : vector<8x64xbf16>, vector<64x32xbf16>, vector<8x32xf32> -> vector<8x32xf32>
    %c0_100 = arith.constant 0 : index
    %c0_101 = arith.constant 0 : index
    %200 = vector.load %arg14[%c0_100, %c0_101] : memref<1x32xf32, #tpu.memory_space<vmem>>, vector<1x32xf32>
    %201 = vector.shape_cast %200 : vector<1x32xf32> to vector<32xf32>
    %202 = vector.shape_cast %201 : vector<32xf32> to vector<1x32xf32>
    %203 = vector.broadcast %202 : vector<1x32xf32> to vector<8x32xf32>
    %204 = arith.addf %199, %203 : vector<8x32xf32>
    %205 = arith.addf %152, %204 : vector<8x32xf32>
    %c0_102 = arith.constant 0 : index
    %c0_103 = arith.constant 0 : index
    %c0_104 = arith.constant 0 : index
    %206 = vector.load %arg15[%c0_102, %c0_103, %c0_104] : memref<1x8x32xf32, #tpu.memory_space<vmem>>, vector<1x8x32xf32>
    %207 = vector.shape_cast %206 : vector<1x8x32xf32> to vector<8x32xf32>
    %208 = vector.shape_cast %205 : vector<8x32xf32> to vector<1x8x32xf32>
    tpu.vector_store %arg15[%c0_102, %c0_103, %c0_104], %208 {strides = array<i32>} : memref<1x8x32xf32, #tpu.memory_space<vmem>>, vector<1x8x32xf32>,
    return
  }
  func.func @transform_0(%arg0: i32) -> (i32, i32, i32) {
    %c0_i32 = arith.constant 0 : i32
    %c0_i32_0 = arith.constant 0 : i32
    %c0_i32_1 = arith.constant 0 : i32
    return %arg0, %c0_i32, %c0_i32_0 : i32, i32, i32
  }
  func.func @transform_1(%arg0: i32) -> (i32, i32, i32, i32) {
    %c0_i32 = arith.constant 0 : i32
    %c0_i32_0 = arith.constant 0 : i32
    %c0_i32_1 = arith.constant 0 : i32
    %c0_i32_2 = arith.constant 0 : i32
    return %arg0, %c0_i32, %c0_i32_0, %c0_i32_1 : i32, i32, i32, i32
  }
  func.func @transform_2(%arg0: i32) -> (i32, i32) {
    %c0_i32 = arith.constant 0 : i32
    %c0_i32_0 = arith.constant 0 : i32
    %c0_i32_1 = arith.constant 0 : i32
    return %c0_i32, %c0_i32_0 : i32, i32
  }
  func.func @transform_3(%arg0: i32) -> (i32, i32) {
    %c0_i32 = arith.constant 0 : i32
    %c0_i32_0 = arith.constant 0 : i32
    %c0_i32_1 = arith.constant 0 : i32
    return %c0_i32, %c0_i32_0 : i32, i32
  }
  func.func @transform_4(%arg0: i32) -> (i32, i32) {
    %c0_i32 = arith.constant 0 : i32
    %c0_i32_0 = arith.constant 0 : i32
    %c0_i32_1 = arith.constant 0 : i32
    return %c0_i32, %c0_i32_0 : i32, i32
  }
  func.func @transform_5(%arg0: i32) -> (i32, i32) {
    %c0_i32 = arith.constant 0 : i32
    %c0_i32_0 = arith.constant 0 : i32
    %c0_i32_1 = arith.constant 0 : i32
    return %c0_i32, %c0_i32_0 : i32, i32
  }
  func.func @transform_6(%arg0: i32) -> (i32, i32) {
    %c0_i32 = arith.constant 0 : i32
    %c0_i32_0 = arith.constant 0 : i32
    %c0_i32_1 = arith.constant 0 : i32
    return %c0_i32, %c0_i32_0 : i32, i32
  }
  func.func @transform_7(%arg0: i32) -> (i32, i32) {
    %c0_i32 = arith.constant 0 : i32
    %c0_i32_0 = arith.constant 0 : i32
    %c0_i32_1 = arith.constant 0 : i32
    return %c0_i32, %c0_i32_0 : i32, i32
  }
  func.func @transform_8(%arg0: i32) -> (i32, i32) {
    %c0_i32 = arith.constant 0 : i32
    %c0_i32_0 = arith.constant 0 : i32
    %c0_i32_1 = arith.constant 0 : i32
    return %c0_i32, %c0_i32_0 : i32, i32
  }
  func.func @transform_9(%arg0: i32) -> (i32, i32) {
    %c0_i32 = arith.constant 0 : i32
    %c0_i32_0 = arith.constant 0 : i32
    %c0_i32_1 = arith.constant 0 : i32
    return %c0_i32, %c0_i32_0 : i32, i32
  }
  func.func @transform_10(%arg0: i32) -> (i32, i32) {
    %c0_i32 = arith.constant 0 : i32
    %c0_i32_0 = arith.constant 0 : i32
    %c0_i32_1 = arith.constant 0 : i32
    return %c0_i32, %c0_i32_0 : i32, i32
  }
  func.func @transform_11(%arg0: i32) -> (i32, i32) {
    %c0_i32 = arith.constant 0 : i32
    %c0_i32_0 = arith.constant 0 : i32
    %c0_i32_1 = arith.constant 0 : i32
    return %c0_i32, %c0_i32_0 : i32, i32
  }
  func.func @transform_12(%arg0: i32) -> (i32, i32) {
    %c0_i32 = arith.constant 0 : i32
    %c0_i32_0 = arith.constant 0 : i32
    %c0_i32_1 = arith.constant 0 : i32
    return %c0_i32, %c0_i32_0 : i32, i32
  }
  func.func @transform_13(%arg0: i32) -> (i32, i32) {
    %c0_i32 = arith.constant 0 : i32
    %c0_i32_0 = arith.constant 0 : i32
    %c0_i32_1 = arith.constant 0 : i32
    return %c0_i32, %c0_i32_0 : i32, i32
  }
  func.func @transform_14(%arg0: i32) -> (i32, i32, i32) {
    %c0_i32 = arith.constant 0 : i32
    %c0_i32_0 = arith.constant 0 : i32
    %c0_i32_1 = arith.constant 0 : i32
    return %arg0, %c0_i32, %c0_i32_0 : i32, i32, i32
  }
}

</mosaic_0001>

<bundles_post_ra>
// kernel: tpu_custom_call.1
= control target key start
LH: loop header
LB: loop body
LE: loop exit
PB: predicated region body
PF: predicated region fallthrough
CT: control target
= control target key end

     0   :  { %6 = vsyncpa [#allocation3], 0  ;;  %s115_s0 = inlined_call_operand.hbm [shape: f32[8,128], index: 0, kind: input, shape index: {}]   ;;  %s116_s1 = inlined_call_operand.hbm [shape: f32[8,128], index: 1, kind: output, shape index: {}]  }
   0x1   :  { %7 = vsyncpa [#allocation4], 0  ;;  %s13_s8 = sshll.u32 %s115_s0, 4  ;;  %s97_s9 = smov [#allocation2]   ;;  %s14_s8 = int_to_ptr.hbm [resolvable:$true] %s13_s8 }
   0x2   :  { %s15_s10 = sshll.u32 %s97_s9, 4  ;;  %s16_s10 = int_to_ptr.vmem [resolvable:$true] %s15_s10 }
   0x3   :  { %18 = dma.hbm_to_vmem [thread:$0]  %s14_s8, 128, %s16_s10, [#allocation3]  }
   0x4   :  { %93 = dma.done.wait [#allocation3], 128  }
   0x5   :  { %94 = vsyncadd [#allocation3], 4294967168  ;;  %s98_s11 = smov [#allocation5]   ;;  %s33_s15 = sshll.u32 %s116_s1, 4  ;;  %v23_v0 = vld [vmem:[#allocation2] sm:$0xff]  ;;  %s34_s15 = int_to_ptr.hbm [resolvable:$true] %s33_s15 }
   0x6   :  { %s31_s12 = sshll.u32 %s98_s11, 4  ;;  %v24_v1 = vadd.f32 1.0, %v23_v0  ;;  %s32_s12 = int_to_ptr.vmem [resolvable:$true] %s31_s12 }
   0x8   :  { %25 = vst [vmem:[#allocation5] sm:$0xff] %v24_v1 }
   0x9   :  { %36 = dma.vmem_to_hbm [thread:$0]  %s32_s12, 128, %s34_s15, [#allocation4]  }
   0xa   :  { %95 = dma.done.wait [#allocation4], 128  }
   0xb   :  { %96 = vsyncadd [#allocation4], 4294967168 }
   0xc   :  { %41 = vsyncpa [#allocation3], 1 }
   0xd   :  { %42 = vsyncpa [#allocation4], 1 }

// kernel: clip_encoder.3
= control target key start
LH: loop header
LB: loop body
LE: loop exit
PB: predicated region body
PF: predicated region fallthrough
CT: control target
= control target key end

     0   :  { %s1802_s0 = inlined_call_operand.hbm [shape: f32[2,8,32], index: 0, kind: input, shape index: {}, may-alias: {0,14}]   ;;  %s1803_s1 = inlined_call_operand.vmem [shape: f32[2,1,8,8], index: 1, kind: input, shape index: {}]   ;;  %s1804_s2 = inlined_call_operand.vmem [shape: f32[1,32], index: 2, kind: input, shape index: {}]   ;;  %s1805_s3 = inlined_call_operand.vmem [shape: f32[1,32], index: 3, kind: input, shape index: {}]   ;;  %s1806_s4 = inlined_call_operand.vmem [shape: bf16[32,96], index: 4, kind: input, shape index: {}]   ;;  %s1807_s5 = inlined_call_operand.vmem [shape: f32[1,96], index: 5, kind: input, shape index: {}]   ;;  %s1808_s6 = inlined_call_operand.vmem [shape: bf16[32,32], index: 6, kind: input, shape index: {}]   ;;  %s1809_s7 = inlined_call_operand.vmem [shape: f32[1,32], index: 7, kind: input, shape index: {}]   ;;  %s1810_s8 = inlined_call_operand.vmem [shape: f32[1,32], index: 8, kind: input, shape index: {}]   ;;  %s1811_s9 = inlined_call_operand.vmem [shape: f32[1,32], index: 9, kind: input, shape index: {}]   ;;  %s1812_s10 = inlined_call_operand.vmem [shape: bf16[32,64], index: 10, kind: input, shape index: {}]   ;;  %s1813_s11 = inlined_call_operand.vmem [shape: f32[1,64], index: 11, kind: input, shape index: {}]   ;;  %s1814_s12 = inlined_call_operand.vmem [shape: bf16[64,32], index: 12, kind: input, shape index: {}]   ;;  %s1815_s13 = inlined_call_operand.vmem [shape: f32[1,32], index: 13, kind: input, shape index: {}]   ;;  %s1816_s14 = inlined_call_operand.hbm [shape: f32[2,8,32], index: 14, kind: output, shape index: {}, may-alias: {0,14}]  }
   0x1   :  { %1825 = sst [smem:[#allocation18_spill]] %s1815_s13 }
   0x2   :  { %1826 = sst [smem:[#allocation19_spill]] %s1816_s14 }
   0x3   :  { %19 = vsyncpa [#allocation7], 0 }
   0x4   :  { %21 = vsyncpa [#allocation7 + $0x1], 0 }
   0x5   :  { %22 = vsyncpa [#allocation8], 0 }
   0x6   :  { %24 = vsyncpa [#allocation8 + $0x1], 0  ;;  %s1536_s29 = smov 0   ;;  %s1538_s30 = smov 0  }
   0x7   :  { %s1540_s15 = smov 0   ;;  %s1542_s16 = smov 0  }
   0x8 LB: > { %1827 = sst [smem:[#allocation12_spill]] %s1432_s29  ;;  %s1557_s17 = sadd.s32 4294967295, %s1444_s16   ;;  %s1444_s16 = sphi %s1542_s16, %s1844_s16   ;;  %s1440_s15 = sphi %s1540_s15, %s1846_s15   ;;  %s1436_s30 = sphi %s1538_s30, %s1848_s30   ;;  %s1432_s29 = sphi %s1536_s29, %s1847_s29  }
   0x9   : > { %1828 = sst [smem:[#allocation13_spill]] %s1440_s15  ;;  %s1177_s18 = sadd.s32 4294967294, %s1444_s16  }
   0xa   : > { %s1561_s19 = sadd.s32 1, %s1444_s16   ;;  %s37_s20 = sadd.s32 1, %s1440_s15 }
   0xb   : > { %1829 = sst [smem:[#allocation14_spill]] %s1561_s19  ;;  %s34_s21 = ssub.s32 %s1444_s16, %s1561_s19 }
   0xc   : > { %p44_p0 = scmp.ne.s32.totalorder %s1440_s15, %s1436_s30  ;;  %p35_p1 = scmp.eq.s32.totalorder %s34_s21, 0 }
   0xd   : > { %p45_p2 = scmp.eq.s32.totalorder %s1444_s16, 0  ;;  %p50_p3 = scmp.ne.s32.totalorder %s1436_s30, %s1432_s29 }
   0xe   : > { %p51_p4 = scmp.eq.s32.totalorder %s1557_s17, 0  ;;  %p352_p7 = scmp.eq.s32.totalorder %s1557_s17, 1 }
   0xf   : > { %s1573_s22 = scalar_select %p35_p1, %s1440_s15, %s37_s20  }
  0x10   : > { %p1575_p5 = por %p45_p2, %p44_p0  ;;  %p1579_p6 = por %p51_p4, %p50_p3 }
  0x11   : > { %1830 = sst [smem:[#allocation15_spill]] %s1573_s22  ;;  %p358_p8 = scmp.eq.s32.totalorder %s1177_s18, 1 }
  0x12   : > { %p1265_p10 = scmp.lt.s32.totalorder %s1444_s16, 2  ;;  %p1586_p11 = por %p352_p7, %p44_p0 }
  0x13   : > { %p1590_p12 = por %p358_p8, %p50_p3  ;;  %s414_s27 = sand.u32 1, %s1440_s15  }
  0x14   : > { %s1833_s25 = scalar_select %p1586_p11, 1, 0 }
  0x15   : > { %s1835_s26 = scalar_select %p1590_p12, 1, 0 }
  0x16   : > { %1834 = sst [smem:[#allocation16_spill]] %s1833_s25  ;;  %s1181_s28 = sshll.u32 %s1444_s16, 3 }
  0x17   : > { %1836 = sst [smem:[#allocation17_spill]] %s1835_s26  ;;  %s1180_s20 = sshll.u32 %s414_s27, 3 }
  0x18   : > { %s422_s19 = scalar_lea.hbm %s1802_s0, %s1181_s28  ;;  %s418_s18 = scalar_lea.vmem [#allocation6], %s1180_s20 }
  0x19   : > { %s424_s29 = sshll.u32 %s422_s19, 4  ;;  %s426_s14 = sshll.u32 %s418_s18, 4  ;;  %s425_s29 = int_to_ptr.hbm [resolvable:$true] %s424_s29  ;;  %s427_s14 = int_to_ptr.vmem [resolvable:$true] %s426_s14 }
  0x1a   : > { %p1601_p13 = pnand %p1265_p10, %p1575_p5  ;;  %p1182_p0 = scmp.ge.s32.totalorder %s1444_s16, 1 }
  0x1b   : > { %p438_p1 = scmp.lt.s32.totalorder %s1444_s16, 3  ;;  %s415_s15 = scalar_lea.sflag [#allocation7], %s414_s27 }
  0x1c   : > { %s1348_s26 = sshra.s32 %s425_s29, 4  ;;  %p1352_p3 = pneg %p1601_p13  ;;  %s1349_s26 = int_to_ptr.hbm [resolvable:$true] %s1348_s26 }
  0x1d   : > { %s1350_s25 = scalar_lea.hbm %s1349_s26, 8  ;;  %s1355_s23 = scalar_lea.hbm %s1802_s0, 16 }
  0x1e   : > { %p1351_p2 = scmp.ne.s32.totalorder %s1349_s26, %s1350_s25  ;;  %p1356_p5 = scmp.lt.s32.totalorder %s1349_s26, %s1802_s0 }
  0x1f   : > { %p1357_p8 = scmp.lt.s32.totalorder %s1355_s23, %s1350_s25 }
  0x20   : > { %p1353_p4 = pnand %p1352_p3, %p1351_p2 }
  0x21   : > { %p1358_p10 = por %p1357_p8, %p1356_p5 }
  0x22   : > { %p1354_p7 = pneg %p1353_p4 }
  0x24   : > { %p1359_p9 = pnand %p1358_p10, %p1354_p7 }
  0x26   : > { %1362 = shalt.err (!%p1359_p9)
}
  0x27   : > { %1260 = dma.hbm_to_vmem [thread:$0]  (!%p1601_p13), %s425_s29, 128, %s427_s14, %s415_s15  }
  0x28   : > { %p439_p2 = pnand %p1182_p0, %p438_p1 }
  0x29   : > { %s1622_s27 = sand.u32 (!%p439_p2), 1, %s1436_s30  }
  0x2a   : > { %442 = sbr.rel (%p439_p2) target bundleno = 1969 (0x7b1), region = 76  ;;  %s1183_s25 = sshll.u32 (!%p439_p2), %s1622_s27, 3 }
  0x2b   : > { %s445_s26 = scalar_lea.sflag (!%p439_p2), [#allocation7], %s1622_s27  ;;  %s448_s21 = scalar_lea.vmem (!%p439_p2), [#allocation6], %s1183_s25 }
  0x2f   : > { %1423 = dma.done.wait (%p1579_p6), %s445_s26, 128  }
  0x30   : > { %1425 = vsyncadd (%p1579_p6), %s445_s26, 4294967168  ;;  %vm504_vm0 = vcmask 261120   ;;  %v1632_v0 = vld [vmem:[%s448_s21] sm:$0xff]  ;;  %v1446_v2 = vmov 32.0   ;;  %v1244_v14 = vld [vmem:[%s1806_s4 + $0x8] sm:$0xff]  ;;  %vm583_vm5 = vcmask 60416  }
  0x31   : > { %v505_v1 = vsel %vm504_vm0, %v1632_v0, 0.0  ;;  %1322 = vrcp.f32 %v1446_v2  ;;  %574 = vmatpush.bf16.msra.mxu0 %v1244_v14  ;;  %v1243_v15 = vld [vmem:[%s1806_s4] sm:$0xff]  ;;  %s1447_s20 = smov 72   ;;  %s1448_s26 = smov 88   ;;  %vm650_vm6 = vcmask 64512   ;;  %vm798_vm7 = vcmask 1043456  }
  0x32   : > { %506 = vadd.xlane.f32.xlu0 %v505_v1  ;;  %v1314_v25 = vld [vmem:[%s1804_s2] ss:$0 sm:$0xff]  ;;  %s1449_s21 = smov 120   ;;  %s1450_s13 = smov 80   ;;  %vm879_vm8 = vcmask 126016   ;;  %vm886_vm9 = vcmask 191616  }
  0x33   : > { %v1315_v28 = vld [vmem:[%s1805_s3] ss:$0 sm:$0xff]  ;;  %s1451_s14 = smov 112   ;;  %s1452_s29 = smov 104   ;;  %vm893_vm10 = vcmask 257216  }
  0x34   : > { %v1316_v32 = vld [vmem:[%s1807_s5] ss:$0 sm:$0xff]  ;;  %s1453_s15 = smov 96   ;;  %p498_p6 = scmp.lt.s32.totalorder %s1557_s17, 1 }
  0x35   : > { %575 = vmatpush.bf16.msra.mxu0 %v1243_v15  ;;  %s1454_s28 = smov 48   ;;  %s1839_s22 = sld [smem:[#allocation19_spill]] }
  0x36   : > { %s499_s24 = scalar_select %p498_p6, %s1557_s17, 1 }
  0x37   : > { %v1323_v3 = vpop.eup %1322 }
  0x38   : > { %v509_v4 = vmul.f32 32.0, %v1323_v3  ;;  %vm513_vm1 = vweird.f32 %v1323_v3  ;;  %s1185_s18 = sshll.u32 %s499_s24, 3  ;;  %s1838_s24 = sld [smem:[#allocation18_spill]] }
  0x39   : > { %s501_s23 = scalar_lea.vmem %s1803_s1, %s1185_s18 }
  0x3a   : > { %v510_v5 = vsub.f32 1.0, %v509_v4  ;;  %v649_v60 = vld [vmem:[%s501_s23] sm:$0xff] }
  0x3c   : > { %v511_v6 = vmul.f32 %v1323_v3, %v510_v5 }
  0x3e   : > { %v512_v7 = vadd.f32 %v1323_v3, %v511_v6 }
  0x40   : > { %v1636_v8 = vsel %vm513_vm1, %v1323_v3, %v512_v7 }
  0xa5   : > { %v507_v9 = vpop.xlane.xlu0 %506 }
  0xa6   : > { %v515_v10 = vmul.f32 %v1636_v8, %v507_v9 }
  0xa8   : > { %v516_v11 = vsub.f32 %v1632_v0, %v515_v10 }
  0xaa   : > { %v517_v12 = vmul.f32 %v516_v11, %v516_v11 }
  0xac   : > { %v518_v13 = vsel %vm504_vm0, %v517_v12, 0.0 }
  0xad   : > { %519 = vadd.xlane.f32.xlu0 %v518_v13 }
 0x120   : > { %v520_v16 = vpop.xlane.xlu0 %519 }
 0x121   : > { %v521_v17 = vmul.f32 %v520_v16, %v1636_v8 }
 0x123   : > { %v522_v18 = vadd.f32 1e-05, %v521_v17 }
 0x125   : > { %1324 = vrsqrt.f32 %v522_v18  ;;  %vm529_vm3 = vweird.f32 %v522_v18 }
 0x12b   : > { %v1325_v19 = vpop.eup %1324 }
 0x12c   : > { %v524_v20 = vmul.f32 %v1325_v19, %v522_v18  ;;  %vm530_vm2 = vweird.f32 %v1325_v19 }
 0x12d   : > { %vm531_vm4 = vmor %vm529_vm3, %vm530_vm2  ;;  %vm1060_vm3 = vcmask 523264  }
 0x12e   : > { %v525_v21 = vmul.f32 %v1325_v19, %v524_v20 }
 0x130   : > { %v526_v22 = vmul.f32 0.5, %v525_v21 }
 0x132   : > { %v527_v23 = vsub.f32 1.5, %v526_v22 }
 0x134   : > { %v528_v24 = vmul.f32 %v1325_v19, %v527_v23 }
 0x136   : > { %v532_v26 = vsel %vm531_vm4, %v1325_v19, %v528_v24 }
 0x137   : > { %v533_v27 = vmul.f32 %v532_v26, %v516_v11 }
 0x139   : > { %v538_v29 = vmul.f32 %v1314_v25, %v533_v27 }
 0x13b   : > { %v543_v30 = vadd.f32 %v1315_v28, %v538_v29 }
 0x13d   : > { %v544_v31 = vpack.c.bf16 %v543_v30, %v543_v30 }
 0x13f   : > { %1194 = vmatmul.msk.bf16.vlgmr.msra.gmra.mxu0 %vm504_vm0, %v544_v31 }
 0x1bc   : > { %v577_v33 = vpop.f32.mrf.mxu0 }
 0x1bd   : > { %v578_v34 = vadd.f32 %v1316_v32, %v577_v33 }
 0x1bf   : > { %v581_v35 = vmul.f32 0.35355338, %v578_v34  ;;  %v1658_v36 = vpack.c.bf16 %v578_v34, %v578_v34 }
 0x1c1   : > { %v582_v37 = vpack.c.bf16 %v581_v35, %v581_v35  ;;  %631 = vrot.lane.b32.xlu0 %v1658_v36, %s1447_s20  ;;  %601 = vrot.lane.b32.xlu1 %v1658_v36, %s1448_s26  ;;  %s1455_s20 = smov 56   ;;  %s1456_s26 = smov 64  }
 0x1c3   : > { %584 = vst.msk [vmem:[#allocation2] sm:$0xf] %vm583_vm5, %v582_v37  ;;  %596 = vrot.lane.b32.xlu2 %v582_v37, %s1449_s21  ;;  %s1457_s21 = smov 40  }
 0x1c4   : > { %v579_v38 = vpop.f32.mrf.mxu0 }
 0x1c9   : > { %616 = vrot.lane.b32.xlu1 %v1658_v36, %s1450_s13  ;;  %s1458_s13 = smov 16  }
 0x1ca   : > { %v641_v51 = vld [vmem:[#allocation2] sm:$0xf] }
 0x1cb   : > { %611 = vrot.lane.b32.xlu2 %v582_v37, %s1451_s14  ;;  %s1459_s14 = smov 8  }
 0x1d1   : > { %626 = vrot.lane.b32.xlu1 %v582_v37, %s1452_s29  ;;  %s1460_s29 = smov 24  }
 0x1d3   : > { %587 = vrot.lane.b32.xlu2 %v1658_v36, %s1453_s15 }
 0x21d   : > { %v597_v39 = vpop.permute.xlu2 %596 }
 0x21e   : > { %600 = vst.msk [vmem:[#allocation2 + $0x4] sm:$0xf] %vm583_vm5, %v597_v39 }
 0x225   : > { %v612_v40 = vpop.permute.xlu2 %611  ;;  %v642_v54 = vld [vmem:[#allocation2 + $0x4] sm:$0xf] }
 0x226   : > { %615 = vst.msk [vmem:[#allocation2 + $0x8] sm:$0xf] %vm583_vm5, %v612_v40 }
 0x22d   : > { %v588_v41 = vpop.permute.xlu2 %587  ;;  %v643_v56 = vld [vmem:[#allocation2 + $0x8] sm:$0xf] }
 0x22e   : > { %590 = vst.msk [vmem:[#allocation3] sm:$0xf] %vm583_vm5, %v588_v41 }
 0x233   : > { %v632_v42 = vpop.permute.xlu0 %631  ;;  %v602_v43 = vpop.permute.xlu1 %601 }
 0x234   : > { %635 = vst.msk [vmem:[#allocation3 + $0xc] sm:$0xf] %vm583_vm5, %v632_v42 }
 0x235   : > { %605 = vst.msk [vmem:[#allocation3 + $0x4] sm:$0xf] %vm583_vm5, %v602_v43  ;;  %v645_v44 = vld [vmem:[#allocation3] sm:$0xf] }
 0x236   : > { %v655_v45 = vsel %vm650_vm6, %v645_v44, 0 }
 0x237   : > { %664 = vmatpush.bf16.xpose.msra.mxu1 %v655_v45 }
 0x23b   : > { %v617_v46 = vpop.permute.xlu1 %616  ;;  %v648_v47 = vld [vmem:[#allocation3 + $0xc] sm:$0xf] }
 0x23c   : > { %620 = vst.msk [vmem:[#allocation3 + $0x8] sm:$0xf] %vm583_vm5, %v617_v46  ;;  %v646_v48 = vld [vmem:[#allocation3 + $0x4] sm:$0xf]  ;;  %v712_v49 = vsel %vm650_vm6, %v648_v47, 0 }
 0x23d   : > { %v674_v50 = vsel %vm650_vm6, %v646_v48, 0  ;;  %721 = vmatpush.bf16.xpose.msrb.mxu0 %v712_v49 }
 0x23e   : > { %683 = vmatpush.bf16.xpose.msra.mxu2 %v674_v50  ;;  %1195 = vmatmul.msk.bf16.vlgmr.msra.gmra.mxu1 %vm650_vm6, %v641_v51 }
 0x243   : > { %v627_v52 = vpop.permute.xlu1 %626  ;;  %v647_v53 = vld [vmem:[#allocation3 + $0x8] sm:$0xf] }
 0x244   : > { %630 = vst.msk [vmem:[#allocation2 + $0xc] sm:$0xf] %vm583_vm5, %v627_v52  ;;  %v693_v55 = vsel %vm650_vm6, %v647_v53, 0 }
 0x245   : > { %1196 = vmatmul.msk.bf16.vlgmr.msra.gmra.mxu2 %vm650_vm6, %v642_v54  ;;  %702 = vmatpush.bf16.xpose.msra.mxu3 %v693_v55 }
 0x24b   : > { %v644_v57 = vld [vmem:[#allocation2 + $0xc] sm:$0xf] }
 0x24c   : > { %1197 = vmatmul.msk.bf16.vlgmr.msra.gmra.mxu3 %vm650_vm6, %v643_v56  ;;  %1198 = vmatmul.msk.bf16.vlgmr.msrb.gmra.mxu0 %vm650_vm6, %v644_v57 }
 0x2bb   : > { %v666_v58 = vpop.f32.mrf.mxu1 }
 0x2bc   : > { %v667_v10 = vadd.f32 %v666_v58, %v649_v60 }
 0x2be   : > { %v727_v12 = vsel %vm650_vm6, %v667_v10, -inf }
 0x2c3   : > { %v668_v59 = vpop.f32.mrf.mxu1 }
 0x2c8   : > { %v685_v61 = vpop.f32.mrf.mxu2 }
 0x2c9   : > { %v686_v62 = vadd.f32 %v685_v61, %v649_v60  ;;  %v723_v63 = vpop.f32.mrf.mxu0 }
 0x2ca   : > { %v724_v1 = vadd.f32 %v723_v63, %v649_v60 }
 0x2cb   : > { %v730_v2 = vsel %vm650_vm6, %v686_v62, -inf }
 0x2cc   : > { %731 = vmax.xlane.f32.xlu1 %v730_v2  ;;  %v736_v3 = vsel %vm650_vm6, %v724_v1, -inf }
 0x2cd   : > { %737 = vmax.xlane.f32.xlu0 %v736_v3 }
 0x2cf   : > { %v704_v4 = vpop.f32.mrf.mxu3 }
 0x2d0   : > { %v687_v5 = vpop.f32.mrf.mxu2  ;;  %v705_v6 = vadd.f32 %v704_v4, %v649_v60 }
 0x2d1   : > { %v725_v7 = vpop.f32.mrf.mxu0 }
 0x2d2   : > { %v733_v9 = vsel %vm650_vm6, %v705_v6, -inf }
 0x2d3   : > { %734 = vmax.xlane.f32.xlu2 %v733_v9 }
 0x2d7   : > { %v706_v11 = vpop.f32.mrf.mxu3 }
 0x2db   : > { %728 = vmax.xlane.f32.xlu2 %v727_v12 }
 0x2e1   : > { %621 = vrot.lane.b32.xlu0 %v1658_v36, %s1454_s28 }
 0x33f   : > { %v732_v13 = vpop.xlane.xlu1 %731 }
 0x340   : > { %v740_v14 = vsub.f32 %v686_v62, %v732_v13  ;;  %v738_v15 = vpop.xlane.xlu0 %737 }
 0x341   : > { %v742_v16 = vsub.f32 %v724_v1, %v738_v15 }
 0x342   : > { %v745_v17 = vmul.f32 1.442695, %v740_v14 }
 0x343   : > { %v749_v18 = vmul.f32 1.442695, %v742_v16 }
 0x344   : > { %1326 = vpow2.f32 %v745_v17 }
 0x345   : > { %1328 = vpow2.f32 %v749_v18 }
 0x346   : > { %v735_v19 = vpop.xlane.xlu2 %734 }
 0x347   : > { %v741_v20 = vsub.f32 %v705_v6, %v735_v19 }
 0x349   : > { %v747_v21 = vmul.f32 1.442695, %v741_v20 }
 0x34a   : > { %v1690_v22 = vpop.eup %1326 }
 0x34b   : > { %v1329_v23 = vpop.eup %1328  ;;  %1330 = vpow2.f32 %v747_v21  ;;  %v754_v24 = vsel %vm650_vm6, %v1690_v22, 0.0  ;;  %v768_v57 = vpack.c.bf16 %v1690_v22, %v1690_v22 }
 0x34c   : > { %755 = vadd.xlane.f32.xlu1 %v754_v24  ;;  %v760_v25 = vsel %vm650_vm6, %v1329_v23, 0.0  ;;  %v770_v46 = vpack.c.bf16 %v1329_v23, %v1329_v23 }
 0x34d   : > { %761 = vadd.xlane.f32.xlu2 %v760_v25  ;;  %v776_v63 = vunpack.c.l.bf16 %v768_v57 }
 0x34e   : > { %v729_v26 = vpop.xlane.xlu2 %728  ;;  %v778_v52 = vunpack.c.l.bf16 %v770_v46 }
 0x34f   : > { %v739_v27 = vsub.f32 %v667_v10, %v729_v26 }
 0x351   : > { %v1331_v28 = vpop.eup %1330  ;;  %v743_v29 = vmul.f32 1.442695, %v739_v27  ;;  %v1246_v27 = vld [vmem:[%s1808_s6 + $0x8] sm:$0xff] }
 0x352   : > { %v757_v31 = vsel %vm650_vm6, %v1331_v28, 0.0  ;;  %v769_v41 = vpack.c.bf16 %v1331_v28, %v1331_v28  ;;  %v1245_v28 = vld [vmem:[%s1808_s6] sm:$0xff] }
 0x353   : > { %1332 = vpow2.f32 %v743_v29  ;;  %v622_v30 = vpop.permute.xlu0 %621 }
 0x354   : > { %625 = vst.msk [vmem:[#allocation4 + $0x8] sm:$0xf] %vm583_vm5, %v622_v30  ;;  %v777_v47 = vunpack.c.l.bf16 %v769_v41 }
 0x355   : > { %758 = vadd.xlane.f32.xlu2 %v757_v31 }
 0x359   : > { %v1333_v32 = vpop.eup %1332 }
 0x35a   : > { %v751_v33 = vsel %vm650_vm6, %v1333_v32, 0.0  ;;  %v767_v5 = vpack.c.bf16 %v1333_v32, %v1333_v32 }
 0x35b   : > { %752 = vadd.xlane.f32.xlu0 %v751_v33  ;;  %v793_v34 = vld [vmem:[#allocation4 + $0x8] sm:$0xf]  ;;  %v1317_v33 = vld [vmem:[%s1809_s7] ss:$0 sm:$0xff] }
 0x35c   : > { %v838_v35 = vsel %vm798_vm7, %v793_v34, 0  ;;  %v775_v10 = vunpack.c.l.bf16 %v767_v5 }
 0x35d   : > { %847 = vmatpush.bf16.msrb.mxu3 %v838_v35 }
 0x365   : > { %606 = vrot.lane.b32.xlu1 %v1658_v36, %s1455_s20  ;;  %s497_s20 = scalar_lea.vmem [#allocation9], %s1183_s25  ;;  %s1398_s25 = scalar_lea.hbm %s1839_s22, 16 }
 0x36d   : > { %591 = vrot.lane.b32.xlu1 %v1658_v36, %s1456_s26  ;;  %636 = vrot.lane.b32.xlu2 %v1658_v36, %s1457_s21  ;;  %s1092_s26 = sshll.u32 %s497_s20, 4  ;;  %s1093_s26 = int_to_ptr.vmem [resolvable:$true] %s1092_s26 }
 0x3bf   : > { %v756_v39 = vpop.xlane.xlu1 %755 }
 0x3c0   : > { %v762_v37 = vpop.xlane.xlu2 %761 }
 0x3c1   : > { %1334 = vrcp.f32 %v762_v37 }
 0x3c7   : > { %v1335_v40 = vpop.eup %1334 }
 0x3c8   : > { %v759_v38 = vpop.xlane.xlu2 %758  ;;  %v774_v43 = vpack.c.bf16 %v1335_v40, %v1335_v40 }
 0x3c9   : > { %1336 = vrcp.f32 %v759_v38 }
 0x3ca   : > { %1338 = vrcp.f32 %v756_v39  ;;  %v782_v36 = vunpack.c.l.bf16 %v774_v43 }
 0x3cc   : > { %v786_v55 = vmul.f32 %v782_v36, %v778_v52 }
 0x3ce   : > { %v753_v49 = vpop.xlane.xlu0 %752  ;;  %v790_v62 = vpack.c.bf16 %v786_v55, %v786_v55 }
 0x3cf   : > { %v1337_v42 = vpop.eup %1336  ;;  %1340 = vrcp.f32 %v753_v49 }
 0x3d0   : > { %v773_v44 = vpack.c.bf16 %v1337_v42, %v1337_v42  ;;  %v637_v45 = vpop.permute.xlu2 %636  ;;  %v1339_v50 = vpop.eup %1338 }
 0x3d1   : > { %640 = vst.msk [vmem:[#allocation4 + $0xc] sm:$0xf] %vm583_vm5, %v637_v45  ;;  %v772_v53 = vpack.c.bf16 %v1339_v50, %v1339_v50  ;;  %v1248_v45 = vld [vmem:[%s1812_s10 + $0x8] sm:$0xff] }
 0x3d2   : > { %v781_v48 = vunpack.c.l.bf16 %v773_v44 }
 0x3d3   : > { %v780_v60 = vunpack.c.l.bf16 %v772_v53 }
 0x3d4   : > { %v785_v51 = vmul.f32 %v781_v48, %v777_v47 }
 0x3d5   : > { %v1341_v61 = vpop.eup %1340  ;;  %v784_v1 = vmul.f32 %v780_v60, %v776_v63  ;;  %v1252_v60 = vld [vmem:[%s1814_s12 + $0x18] sm:$0xff]  ;;  %v1320_v63 = vld [vmem:[%s1813_s11] ss:$0 sm:$0xff] }
 0x3d6   : > { %v789_v54 = vpack.c.bf16 %v785_v51, %v785_v51  ;;  %v771_v2 = vpack.c.bf16 %v1341_v61, %v1341_v61  ;;  %1068 = vmatpush.bf16.msra.mxu3 %v1252_v60  ;;  %v1251_v61 = vld [vmem:[%s1814_s12 + $0x10] sm:$0xff] }
 0x3d7   : > { %v607_v56 = vpop.permute.xlu1 %606  ;;  %v788_v7 = vpack.c.bf16 %v784_v1, %v784_v1 }
 0x3d8   : > { %610 = vst.msk [vmem:[#allocation4 + $0x4] sm:$0xf] %vm583_vm5, %v607_v56  ;;  %1201 = vmatmul.msk.bf16.vlgmr.msrb.gmra.mxu3 %vm650_vm6, %v789_v54  ;;  %v794_v58 = vld [vmem:[#allocation4 + $0xc] sm:$0xf]  ;;  %v779_v9 = vunpack.c.l.bf16 %v771_v2  ;;  %v1318_v54 = vld [vmem:[%s1810_s8] ss:$0 sm:$0xff] }
 0x3d9   : > { %v857_v59 = vsel %vm798_vm7, %v794_v58, 0  ;;  %v1249_v2 = vld [vmem:[%s1814_s12] sm:$0xff] }
 0x3da   : > { %866 = vmatpush.bf16.msra.mxu0 %v857_v59  ;;  %v783_v11 = vmul.f32 %v779_v9, %v775_v10  ;;  %1069 = vmatpush.bf16.msra.mxu3 %v1251_v61 }
 0x3dc   : > { %v787_v14 = vpack.c.bf16 %v783_v11, %v783_v11 }
 0x3dd   : > { %1202 = vmatmul.msk.bf16.vlgmr.msra.gmra.mxu0 %vm650_vm6, %v790_v62  ;;  %v1250_v62 = vld [vmem:[%s1814_s12 + $0x8] sm:$0xff] }
 0x3de   : > { %1070 = vmatpush.bf16.msra.mxu3 %v1250_v62 }
 0x3df   : > { %v592_v3 = vpop.permute.xlu1 %591  ;;  %v792_v4 = vld [vmem:[#allocation4 + $0x4] sm:$0xf] }
 0x3e0   : > { %594 = vst.msk [vmem:[#allocation4] sm:$0xf] %vm583_vm5, %v592_v3  ;;  %v819_v6 = vsel %vm798_vm7, %v792_v4, 0 }
 0x3e1   : > { %828 = vmatpush.bf16.msrb.mxu2 %v819_v6 }
 0x3e2   : > { %1071 = vmatpush.bf16.msra.mxu3 %v1249_v2 }
 0x3e4   : > { %1200 = vmatmul.msk.bf16.vlgmr.msrb.gmra.mxu2 %vm650_vm6, %v788_v7 }
 0x3e5   : > { %995 = vmatpush.bf16.msra.mxu2 %v1248_v45 }
 0x3e7   : > { %v791_v12 = vld [vmem:[#allocation4] sm:$0xf] }
 0x3e8   : > { %v800_v13 = vsel %vm798_vm7, %v791_v12, 0 }
 0x3e9   : > { %809 = vmatpush.bf16.msrb.mxu1 %v800_v13 }
 0x3ec   : > { %1199 = vmatmul.msk.bf16.vlgmr.msrb.gmra.mxu1 %vm650_vm6, %v787_v14 }
 0x3ed   : > { %925 = vmatpush.bf16.msra.mxu1 %v1246_v27 }
 0x3f1   : > { %926 = vmatpush.bf16.msra.mxu1 %v1245_v28 }
 0x45a   : > { %v868_v15 = vpop.f32.mrf.mxu0 }
 0x45b   : > { %v849_v16 = vpop.f32.mrf.mxu3  ;;  %v888_v25 = vpack.c.bf16 %v868_v15, %v868_v15 }
 0x45c   : > { %v881_v17 = vpack.c.bf16 %v849_v16, %v849_v16 }
 0x45e   : > { %883 = vrot.lane.b32.xlu2 %v881_v17, %s1458_s13 }
 0x462   : > { %v870_v18 = vpop.f32.mrf.mxu0 }
 0x463   : > { %v851_v19 = vpop.f32.mrf.mxu3 }
 0x467   : > { %v830_v20 = vpop.f32.mrf.mxu2 }
 0x468   : > { %v874_v21 = vpack.c.bf16 %v830_v20, %v830_v20 }
 0x469   : > { %v811_v22 = vpop.f32.mrf.mxu1 }
 0x46a   : > { %v872_v23 = vpack.c.bf16 %v811_v22, %v811_v22  ;;  %876 = vrot.lane.b32.xlu1 %v874_v21, %s1459_s14  ;;  %s1240_s14 = sshll.u32 %s1557_s17, 3  ;;  %v1321_v22 = vld [vmem:[%s1838_s24] ss:$0 sm:$0xff]  ;;  %s1080_s17 = scalar_lea.sflag [#allocation8], %s1622_s27 }
 0x46b   : > { %s1090_s28 = scalar_lea.hbm %s1839_s22, %s1240_s14 }
 0x46c   : > { %873 = vst.msk [vmem:[#allocation5] sm:$0xf] %vm583_vm5, %v872_v23  ;;  %s1094_s21 = sshll.u32 %s1090_s28, 4  ;;  %s1095_s21 = int_to_ptr.hbm [resolvable:$true] %s1094_s21 }
 0x46d   : > { %s1392_s13 = sshra.s32 %s1095_s21, 4  ;;  %s1393_s13 = int_to_ptr.hbm [resolvable:$true] %s1392_s13 }
 0x46e   : > { %p1399_p1 = scmp.lt.s32.totalorder %s1393_s13, %s1839_s22 }
 0x46f   : > { %v832_v24 = vpop.f32.mrf.mxu2 }
 0x471   : > { %v813_v26 = vpop.f32.mrf.mxu1 }
 0x472   : > { %890 = vrot.lane.b32.xlu1 %v888_v25, %s1460_s29  ;;  %s1394_s29 = scalar_lea.hbm %s1393_s13, 8 }
 0x473   : > { %p1395_p9 = scmp.ne.s32.totalorder %s1393_s13, %s1394_s29  ;;  %p1400_p3 = scmp.lt.s32.totalorder %s1398_s25, %s1394_s29 }
 0x475   : > { %p1396_p13 = pnand %p1395_p9, %p1586_p11  ;;  %p1401_p4 = por %p1400_p3, %p1399_p1 }
 0x477   : > { %p1397_p0 = pneg %p1396_p13 }
 0x479   : > { %p1402_p7 = pnand %p1401_p4, %p1397_p0 }
 0x4b8   : > { %v884_v30 = vpop.permute.xlu2 %883 }
 0x4dc   : > { %v877_v29 = vpop.permute.xlu1 %876 }
 0x4dd   : > { %880 = vst.msk [vmem:[#allocation5] sm:$0xf] %vm879_vm8, %v877_v29 }
 0x4de   : > { %887 = vst.msk [vmem:[#allocation5] sm:$0xf] %vm886_vm9, %v884_v30 }
 0x4e4   : > { %v891_v31 = vpop.permute.xlu1 %890 }
 0x4e5   : > { %894 = vst.msk [vmem:[#allocation5] sm:$0xf] %vm893_vm10, %v891_v31 }
 0x4ec   : > { %v895_v32 = vld [vmem:[#allocation5] sm:$0xf] }
 0x4ed   : > { %1211 = vmatmul.msk.bf16.vlgmr.msra.gmra.mxu1 %vm504_vm0, %v895_v32 }
 0x56a   : > { %v928_v34 = vpop.f32.mrf.mxu1 }
 0x56b   : > { %v929_v35 = vadd.f32 %v1317_v33, %v928_v34 }
 0x56d   : > { %v1726_v37 = vadd.f32 %v929_v35, %v1632_v0  ;;  %v1247_v0 = vld [vmem:[%s1812_s10] sm:$0xff] }
 0x56e   : > { %996 = vmatpush.bf16.msra.mxu2 %v1247_v0 }
 0x56f   : > { %v933_v38 = vsel %vm504_vm0, %v1726_v37, 0.0 }
 0x570   : > { %934 = vadd.xlane.f32.xlu2 %v933_v38 }
 0x572   : > { %v930_v39 = vpop.f32.mrf.mxu1 }
 0x5e3   : > { %v935_v40 = vpop.xlane.xlu2 %934 }
 0x5e4   : > { %v936_v41 = vmul.f32 %v935_v40, %v1636_v8 }
 0x5e6   : > { %v937_v42 = vsub.f32 %v1726_v37, %v936_v41 }
 0x5e8   : > { %v938_v43 = vmul.f32 %v937_v42, %v937_v42 }
 0x5ea   : > { %v939_v44 = vsel %vm504_vm0, %v938_v43, 0.0 }
 0x5eb   : > { %940 = vadd.xlane.f32.xlu1 %v939_v44 }
 0x65e   : > { %v941_v46 = vpop.xlane.xlu1 %940 }
 0x65f   : > { %v942_v47 = vmul.f32 %v941_v46, %v1636_v8  ;;  %v1319_v8 = vld [vmem:[%s1811_s9] ss:$0 sm:$0xff] }
 0x661   : > { %v943_v48 = vadd.f32 1e-05, %v942_v47 }
 0x663   : > { %1342 = vrsqrt.f32 %v943_v48  ;;  %vm950_vm12 = vweird.f32 %v943_v48 }
 0x669   : > { %v1343_v49 = vpop.eup %1342 }
 0x66a   : > { %v945_v50 = vmul.f32 %v1343_v49, %v943_v48  ;;  %vm951_vm11 = vweird.f32 %v1343_v49 }
 0x66b   : > { %vm952_vm13 = vmor %vm950_vm12, %vm951_vm11 }
 0x66c   : > { %v946_v36 = vmul.f32 %v1343_v49, %v945_v50 }
 0x66e   : > { %v947_v51 = vmul.f32 0.5, %v946_v36 }
 0x670   : > { %v948_v52 = vsub.f32 1.5, %v947_v51 }
 0x672   : > { %v949_v53 = vmul.f32 %v1343_v49, %v948_v52 }
 0x674   : > { %v953_v55 = vsel %vm952_vm13, %v1343_v49, %v949_v53 }
 0x675   : > { %v954_v56 = vmul.f32 %v953_v55, %v937_v42 }
 0x677   : > { %v959_v57 = vmul.f32 %v1318_v54, %v954_v56 }
 0x679   : > { %v964_v58 = vadd.f32 %v1319_v8, %v959_v57 }
 0x67b   : > { %v965_v59 = vpack.c.bf16 %v964_v58, %v964_v58 }
 0x67d   : > { %1220 = vmatmul.msk.bf16.vlgmr.msra.gmra.mxu2 %vm504_vm0, %v965_v59 }
 0x700   : > { %v998_v1 = vpop.f32.mrf.mxu2 }
 0x701   : > { %v999_v3 = vadd.f32 %v1320_v63, %v998_v1 }
 0x703   : > { %v1221_v4 = vmul.f32 -1.702, %v999_v3 }
 0x705   : > { %v1004_v5 = vmul.f32 1.442695, %v1221_v4 }
 0x707   : > { %1344 = vpow2.f32 %v1004_v5 }
 0x708   : > { %v1000_v6 = vpop.f32.mrf.mxu2 }
 0x70d   : > { %v1345_v7 = vpop.eup %1344 }
 0x70e   : > { %v1006_v9 = vadd.f32 1.0, %v1345_v7 }
 0x710   : > { %1346 = vrcp.f32 %v1006_v9  ;;  %v1018_v13 = vand.u32 2147483648, %v1006_v9  ;;  %v1016_v15 = vand.u32 2147483647, %v1006_v9  ;;  %vm1012_vm15 = vweird.f32 %v1006_v9 }
 0x712   : > { %v1019_v17 = vor.u32 1.1754944e-38, %v1018_v13  ;;  %vm1017_vm2 = vcmp.eq.f32.partialorder %v1016_v15, 8.507059e+37 }
 0x716   : > { %v1347_v10 = vpop.eup %1346 }
 0x717   : > { %v1008_v11 = vmul.f32 %v1347_v10, %v1006_v9  ;;  %vm1013_vm14 = vweird.f32 %v1347_v10 }
 0x718   : > { %vm1014_vm1 = vmor %vm1012_vm15, %vm1013_vm14 }
 0x719   : > { %v1009_v12 = vsub.f32 1.0, %v1008_v11 }
 0x71b   : > { %v1010_v14 = vmul.f32 %v1347_v10, %v1009_v12 }
 0x71d   : > { %v1011_v16 = vadd.f32 %v1347_v10, %v1010_v14 }
 0x71f   : > { %v1015_v18 = vsel %vm1014_vm1, %v1347_v10, %v1011_v16 }
 0x720   : > { %v1020_v19 = vsel %vm1017_vm2, %v1019_v17, %v1015_v18 }
 0x721   : > { %v1022_v20 = vmul.f32 %v1020_v19, %v999_v3 }
 0x723   : > { %v1023_v21 = vpack.c.bf16 %v1022_v20, %v1022_v20 }
 0x725   : > { %1238 = vmatmul.msk.bf16.vlgmr.msra.gmra.mxu3 %vm1060_vm3, %v1023_v21 }
 0x7a8   : > { %v1073_v23 = vpop.f32.mrf.mxu3 }
 0x7a9   : > { %v1074_v24 = vadd.f32 %v1321_v22, %v1073_v23 }
 0x7ab   : > { %v1077_v25 = vadd.f32 %v1074_v24, %v1726_v37 }
 0x7ad   : > { %1078 = vst.msk [vmem:[%s497_s20] sm:$0xff] %vm504_vm0, %v1077_v25 }
 0x7ae   : > { %1405 = shalt.err (!%p1402_p7)
}
 0x7af   : > { %1255 = dma.vmem_to_hbm [thread:$0]  (%p1586_p11), %s1093_s26, 128, %s1095_s21, %s1080_s17  }
 0x7b0   : > { %v1075_v26 = vpop.f32.mrf.mxu3 }
 0x7b1 PF: > { %s1841_s27 = sld [smem:[#allocation12_spill]]  ;;  %p1843_p5 = scmp.ge.s32.totalorder %s1444_s16, 2 }
 0x7b3   : > { %p1262_p8 = pnand %p1843_p5, %p1590_p12 }
 0x7b5   : > { %p1263_p10 = pneg %p1262_p8 }
 0x7b7   : > { %s1106_s28 = sand.u32 1, %s1841_s27  }
 0x7b8   : > { %s1107_s20 = scalar_lea.sflag [#allocation8], %s1106_s28 }
 0x7b9   : > { %1427 = dma.done.wait (%p1263_p10), %s1107_s20, 128  }
 0x7ba   : > { %1429 = vsyncadd (%p1263_p10), %s1107_s20, 4294967168  ;;  %s1844_s16 = sld [smem:[#allocation14_spill]]  ;;  %s1847_s29 = smov %s1436_s30 }
 0x7bb   : > { %s1845_s13 = sld [smem:[#allocation13_spill]] }
 0x7bc   : > { %s1846_s15 = sld [smem:[#allocation15_spill]] }
 0x7c0   : > { %p27_p2 = scmp.ge.s32.totalorder %s1844_s16, 4  }
 0x7c1   : > { %s1848_s30 = smov %s1845_s13 }
 0x7c2   :  { %29 = sbr.rel (!%p27_p2) target bundleno = 8 (0x8), region = 133 }
 0x7c7   :  { %1113 = vsyncpa [#allocation7], 1 }
 0x7c8   :  { %1115 = vsyncpa [#allocation7 + $0x1], 1 }
 0x7c9   :  { %1116 = vsyncpa [#allocation8], 1 }
 0x7ca   :  { %1118 = vsyncpa [#allocation8 + $0x1], 1 }

// kernel: clip_encoder.2
= control target key start
LH: loop header
LB: loop body
LE: loop exit
PB: predicated region body
PF: predicated region fallthrough
CT: control target
= control target key end

     0   :  { %s1350_s29 = smov 0   ;;  %s1505_s0 = inlined_call_operand.vmem [shape: f32[2,8,32], index: 0, kind: input, shape index: {}, may-alias: {0,14}]   ;;  %s1506_s1 = inlined_call_operand.vmem [shape: f32[2,1,8,8], index: 1, kind: input, shape index: {}]   ;;  %s1507_s2 = inlined_call_operand.vmem [shape: f32[1,32], index: 2, kind: input, shape index: {}]   ;;  %s1508_s3 = inlined_call_operand.vmem [shape: f32[1,32], index: 3, kind: input, shape index: {}]   ;;  %s1509_s4 = inlined_call_operand.vmem [shape: bf16[32,96], index: 4, kind: input, shape index: {}]   ;;  %s1510_s5 = inlined_call_operand.vmem [shape: f32[1,96], index: 5, kind: input, shape index: {}]   ;;  %s1511_s6 = inlined_call_operand.vmem [shape: bf16[32,32], index: 6, kind: input, shape index: {}]   ;;  %s1512_s7 = inlined_call_operand.vmem [shape: f32[1,32], index: 7, kind: input, shape index: {}]   ;;  %s1513_s8 = inlined_call_operand.vmem [shape: f32[1,32], index: 8, kind: input, shape index: {}]   ;;  %s1514_s9 = inlined_call_operand.vmem [shape: f32[1,32], index: 9, kind: input, shape index: {}]   ;;  %s1515_s10 = inlined_call_operand.vmem [shape: bf16[32,64], index: 10, kind: input, shape index: {}]   ;;  %s1516_s11 = inlined_call_operand.vmem [shape: f32[1,64], index: 11, kind: input, shape index: {}]   ;;  %s1517_s12 = inlined_call_operand.vmem [shape: bf16[64,32], index: 12, kind: input, shape index: {}]   ;;  %s1518_s13 = inlined_call_operand.vmem [shape: f32[1,32], index: 13, kind: input, shape index: {}]   ;;  %s1519_s14 = inlined_call_operand.vmem [shape: f32[2,8,32], index: 14, kind: output, shape index: {}, may-alias: {0,14}]  }
   0x1 LB: > { %s1122_s30 = sadd.s32 4294967295, %s1258_s29   ;;  %p1126_p0 = scmp.ge.s32.totalorder %s1258_s29, 1  ;;  %s1258_s29 = sphi %s1350_s29, %s24_s29  }
   0x2   : > { %p420_p1 = scmp.lt.s32.totalorder %s1258_s29, 3 }
   0x4   : > { %p421_p2 = pnand %p1126_p0, %p420_p1 }
   0x5   : > { %p468_p3 = scmp.lt.s32.totalorder (!%p421_p2), %s1122_s30, 1  ;;  %s1262_s16 = smov (!%p421_p2), 88  }
   0x6   : > { %424 = sbr.rel (%p421_p2) target bundleno = 1935 (0x78f), region = 76  ;;  %s1263_s17 = smov (!%p421_p2), 120  }
   0x7   : > { %s1265_s19 = smov (!%p421_p2), 112   ;;  %s1266_s20 = smov (!%p421_p2), 104  }
   0x8   : > { %s1267_s21 = smov (!%p421_p2), 96   ;;  %s1268_s25 = smov (!%p421_p2), 48  }
   0x9   : > { %s1269_s26 = smov (!%p421_p2), 56   ;;  %s1270_s27 = smov (!%p421_p2), 64  }
   0xa   : > { %s1271_s28 = smov (!%p421_p2), 40  }
   0xb   : > { %s1521_s30 = smov (!%p468_p3, %s1122_s30), 1  ;;  %vm482_vm0 = vcmask 261120   ;;  %v1260_v2 = vmov 32.0   ;;  %v1186_v14 = vld [vmem:[%s1509_s4 + $0x8] sm:$0xff]  ;;  %v1185_v15 = vld [vmem:[%s1509_s4] sm:$0xff]  ;;  %vm561_vm5 = vcmask 60416  }
   0xc   : > { %s1358_s15 = sshll.u32 %s1521_s30, 3  ;;  %1226 = vrcp.f32 %v1260_v2  ;;  %552 = vmatpush.bf16.msra.mxu0 %v1186_v14  ;;  %v1218_v25 = vld [vmem:[%s1507_s2] ss:$0 sm:$0xff]  ;;  %s1261_s30 = smov 72   ;;  %vm628_vm6 = vcmask 64512   ;;  %vm776_vm7 = vcmask 1043456  }
   0xd   : > { %s471_s18 = scalar_lea.vmem %s1505_s0, %s1358_s15  ;;  %v1219_v28 = vld [vmem:[%s1508_s3] ss:$0 sm:$0xff]  ;;  %s475_s24 = scalar_lea.vmem %s1506_s1, %s1358_s15  ;;  %vm857_vm8 = vcmask 126016   ;;  %vm864_vm9 = vcmask 191616   ;;  %vm871_vm10 = vcmask 257216  }
   0xe   : > { %v1364_v0 = vld [vmem:[%s471_s18] sm:$0xff]  ;;  %s1264_s18 = smov 80  }
   0xf   : > { %v483_v1 = vsel %vm482_vm0, %v1364_v0, 0.0  ;;  %v1220_v32 = vld [vmem:[%s1510_s5] ss:$0 sm:$0xff] }
  0x10   : > { %484 = vadd.xlane.f32.xlu0 %v483_v1  ;;  %553 = vmatpush.bf16.msra.mxu0 %v1185_v15  ;;  %v627_v60 = vld [vmem:[%s475_s24] sm:$0xff] }
  0x12   : > { %v1227_v3 = vpop.eup %1226 }
  0x13   : > { %v487_v4 = vmul.f32 32.0, %v1227_v3  ;;  %vm491_vm1 = vweird.f32 %v1227_v3 }
  0x15   : > { %v488_v5 = vsub.f32 1.0, %v487_v4 }
  0x17   : > { %v489_v6 = vmul.f32 %v1227_v3, %v488_v5 }
  0x19   : > { %v490_v7 = vadd.f32 %v1227_v3, %v489_v6 }
  0x1b   : > { %v1368_v8 = vsel %vm491_vm1, %v1227_v3, %v490_v7 }
  0x83   : > { %v485_v9 = vpop.xlane.xlu0 %484 }
  0x84   : > { %v493_v10 = vmul.f32 %v1368_v8, %v485_v9 }
  0x86   : > { %v494_v11 = vsub.f32 %v1364_v0, %v493_v10 }
  0x88   : > { %v495_v12 = vmul.f32 %v494_v11, %v494_v11 }
  0x8a   : > { %v496_v13 = vsel %vm482_vm0, %v495_v12, 0.0 }
  0x8b   : > { %497 = vadd.xlane.f32.xlu0 %v496_v13 }
  0xfe   : > { %v498_v16 = vpop.xlane.xlu0 %497 }
  0xff   : > { %v499_v17 = vmul.f32 %v498_v16, %v1368_v8 }
 0x101   : > { %v500_v18 = vadd.f32 1e-05, %v499_v17 }
 0x103   : > { %1228 = vrsqrt.f32 %v500_v18  ;;  %vm507_vm3 = vweird.f32 %v500_v18 }
 0x109   : > { %v1229_v19 = vpop.eup %1228 }
 0x10a   : > { %v502_v20 = vmul.f32 %v1229_v19, %v500_v18  ;;  %vm508_vm2 = vweird.f32 %v1229_v19 }
 0x10b   : > { %vm509_vm4 = vmor %vm507_vm3, %vm508_vm2  ;;  %vm1038_vm3 = vcmask 523264  }
 0x10c   : > { %v503_v21 = vmul.f32 %v1229_v19, %v502_v20 }
 0x10e   : > { %v504_v22 = vmul.f32 0.5, %v503_v21 }
 0x110   : > { %v505_v23 = vsub.f32 1.5, %v504_v22 }
 0x112   : > { %v506_v24 = vmul.f32 %v1229_v19, %v505_v23 }
 0x114   : > { %v510_v26 = vsel %vm509_vm4, %v1229_v19, %v506_v24 }
 0x115   : > { %v511_v27 = vmul.f32 %v510_v26, %v494_v11 }
 0x117   : > { %v516_v29 = vmul.f32 %v1218_v25, %v511_v27 }
 0x119   : > { %v521_v30 = vadd.f32 %v1219_v28, %v516_v29 }
 0x11b   : > { %v522_v31 = vpack.c.bf16 %v521_v30, %v521_v30 }
 0x11d   : > { %1138 = vmatmul.msk.bf16.vlgmr.msra.gmra.mxu0 %vm482_vm0, %v522_v31 }
 0x19a   : > { %v555_v33 = vpop.f32.mrf.mxu0 }
 0x19b   : > { %v556_v34 = vadd.f32 %v1220_v32, %v555_v33 }
 0x19d   : > { %v559_v35 = vmul.f32 0.35355338, %v556_v34  ;;  %v1390_v36 = vpack.c.bf16 %v556_v34, %v556_v34 }
 0x19f   : > { %v560_v37 = vpack.c.bf16 %v559_v35, %v559_v35  ;;  %609 = vrot.lane.b32.xlu0 %v1390_v36, %s1261_s30  ;;  %579 = vrot.lane.b32.xlu1 %v1390_v36, %s1262_s16  ;;  %s1272_s30 = smov 16   ;;  %s1273_s16 = smov 8  }
 0x1a1   : > { %562 = vst.msk [vmem:[#allocation2] sm:$0xf] %vm561_vm5, %v560_v37  ;;  %574 = vrot.lane.b32.xlu2 %v560_v37, %s1263_s17  ;;  %s1274_s17 = smov 24  }
 0x1a2   : > { %v557_v38 = vpop.f32.mrf.mxu0 }
 0x1a7   : > { %594 = vrot.lane.b32.xlu1 %v1390_v36, %s1264_s18  ;;  %s479_s18 = scalar_lea.vmem %s1519_s14, %s1358_s15 }
 0x1a8   : > { %v619_v51 = vld [vmem:[#allocation2] sm:$0xf] }
 0x1a9   : > { %589 = vrot.lane.b32.xlu2 %v560_v37, %s1265_s19 }
 0x1af   : > { %604 = vrot.lane.b32.xlu1 %v560_v37, %s1266_s20 }
 0x1b1   : > { %565 = vrot.lane.b32.xlu2 %v1390_v36, %s1267_s21 }
 0x1fb   : > { %v575_v39 = vpop.permute.xlu2 %574 }
 0x1fc   : > { %578 = vst.msk [vmem:[#allocation2 + $0x4] sm:$0xf] %vm561_vm5, %v575_v39 }
 0x203   : > { %v590_v40 = vpop.permute.xlu2 %589  ;;  %v620_v54 = vld [vmem:[#allocation2 + $0x4] sm:$0xf] }
 0x204   : > { %593 = vst.msk [vmem:[#allocation2 + $0x8] sm:$0xf] %vm561_vm5, %v590_v40 }
 0x20b   : > { %v566_v41 = vpop.permute.xlu2 %565  ;;  %v621_v56 = vld [vmem:[#allocation2 + $0x8] sm:$0xf] }
 0x20c   : > { %568 = vst.msk [vmem:[#allocation3] sm:$0xf] %vm561_vm5, %v566_v41 }
 0x211   : > { %v610_v42 = vpop.permute.xlu0 %609  ;;  %v580_v43 = vpop.permute.xlu1 %579 }
 0x212   : > { %613 = vst.msk [vmem:[#allocation3 + $0xc] sm:$0xf] %vm561_vm5, %v610_v42 }
 0x213   : > { %583 = vst.msk [vmem:[#allocation3 + $0x4] sm:$0xf] %vm561_vm5, %v580_v43  ;;  %v623_v44 = vld [vmem:[#allocation3] sm:$0xf] }
 0x214   : > { %v633_v45 = vsel %vm628_vm6, %v623_v44, 0 }
 0x215   : > { %642 = vmatpush.bf16.xpose.msra.mxu1 %v633_v45 }
 0x219   : > { %v595_v46 = vpop.permute.xlu1 %594  ;;  %v626_v47 = vld [vmem:[#allocation3 + $0xc] sm:$0xf] }
 0x21a   : > { %598 = vst.msk [vmem:[#allocation3 + $0x8] sm:$0xf] %vm561_vm5, %v595_v46  ;;  %v624_v48 = vld [vmem:[#allocation3 + $0x4] sm:$0xf]  ;;  %v690_v49 = vsel %vm628_vm6, %v626_v47, 0 }
 0x21b   : > { %v652_v50 = vsel %vm628_vm6, %v624_v48, 0  ;;  %699 = vmatpush.bf16.xpose.msrb.mxu0 %v690_v49 }
 0x21c   : > { %661 = vmatpush.bf16.xpose.msra.mxu2 %v652_v50  ;;  %1139 = vmatmul.msk.bf16.vlgmr.msra.gmra.mxu1 %vm628_vm6, %v619_v51 }
 0x221   : > { %v605_v52 = vpop.permute.xlu1 %604  ;;  %v625_v53 = vld [vmem:[#allocation3 + $0x8] sm:$0xf] }
 0x222   : > { %608 = vst.msk [vmem:[#allocation2 + $0xc] sm:$0xf] %vm561_vm5, %v605_v52  ;;  %v671_v55 = vsel %vm628_vm6, %v625_v53, 0 }
 0x223   : > { %1140 = vmatmul.msk.bf16.vlgmr.msra.gmra.mxu2 %vm628_vm6, %v620_v54  ;;  %680 = vmatpush.bf16.xpose.msra.mxu3 %v671_v55 }
 0x229   : > { %v622_v57 = vld [vmem:[#allocation2 + $0xc] sm:$0xf] }
 0x22a   : > { %1141 = vmatmul.msk.bf16.vlgmr.msra.gmra.mxu3 %vm628_vm6, %v621_v56  ;;  %1142 = vmatmul.msk.bf16.vlgmr.msrb.gmra.mxu0 %vm628_vm6, %v622_v57 }
 0x299   : > { %v644_v58 = vpop.f32.mrf.mxu1 }
 0x29a   : > { %v645_v10 = vadd.f32 %v644_v58, %v627_v60 }
 0x29c   : > { %v705_v12 = vsel %vm628_vm6, %v645_v10, -inf }
 0x2a1   : > { %v646_v59 = vpop.f32.mrf.mxu1 }
 0x2a6   : > { %v663_v61 = vpop.f32.mrf.mxu2 }
 0x2a7   : > { %v664_v62 = vadd.f32 %v663_v61, %v627_v60  ;;  %v701_v63 = vpop.f32.mrf.mxu0 }
 0x2a8   : > { %v702_v1 = vadd.f32 %v701_v63, %v627_v60 }
 0x2a9   : > { %v708_v2 = vsel %vm628_vm6, %v664_v62, -inf }
 0x2aa   : > { %709 = vmax.xlane.f32.xlu1 %v708_v2  ;;  %v714_v3 = vsel %vm628_vm6, %v702_v1, -inf }
 0x2ab   : > { %715 = vmax.xlane.f32.xlu0 %v714_v3 }
 0x2ad   : > { %v682_v4 = vpop.f32.mrf.mxu3 }
 0x2ae   : > { %v665_v5 = vpop.f32.mrf.mxu2  ;;  %v683_v6 = vadd.f32 %v682_v4, %v627_v60 }
 0x2af   : > { %v703_v7 = vpop.f32.mrf.mxu0 }
 0x2b0   : > { %v711_v9 = vsel %vm628_vm6, %v683_v6, -inf }
 0x2b1   : > { %712 = vmax.xlane.f32.xlu2 %v711_v9 }
 0x2b5   : > { %v684_v11 = vpop.f32.mrf.mxu3 }
 0x2b9   : > { %706 = vmax.xlane.f32.xlu2 %v705_v12 }
 0x2bf   : > { %599 = vrot.lane.b32.xlu0 %v1390_v36, %s1268_s25 }
 0x31d   : > { %v710_v13 = vpop.xlane.xlu1 %709 }
 0x31e   : > { %v718_v14 = vsub.f32 %v664_v62, %v710_v13  ;;  %v716_v15 = vpop.xlane.xlu0 %715 }
 0x31f   : > { %v720_v16 = vsub.f32 %v702_v1, %v716_v15 }
 0x320   : > { %v723_v17 = vmul.f32 1.442695, %v718_v14 }
 0x321   : > { %v727_v18 = vmul.f32 1.442695, %v720_v16 }
 0x322   : > { %1230 = vpow2.f32 %v723_v17 }
 0x323   : > { %1232 = vpow2.f32 %v727_v18 }
 0x324   : > { %v713_v19 = vpop.xlane.xlu2 %712 }
 0x325   : > { %v719_v20 = vsub.f32 %v683_v6, %v713_v19 }
 0x327   : > { %v725_v21 = vmul.f32 1.442695, %v719_v20 }
 0x328   : > { %v1421_v22 = vpop.eup %1230 }
 0x329   : > { %v1233_v23 = vpop.eup %1232  ;;  %1234 = vpow2.f32 %v725_v21  ;;  %v732_v24 = vsel %vm628_vm6, %v1421_v22, 0.0  ;;  %v746_v57 = vpack.c.bf16 %v1421_v22, %v1421_v22 }
 0x32a   : > { %733 = vadd.xlane.f32.xlu1 %v732_v24  ;;  %v738_v25 = vsel %vm628_vm6, %v1233_v23, 0.0  ;;  %v748_v46 = vpack.c.bf16 %v1233_v23, %v1233_v23 }
 0x32b   : > { %739 = vadd.xlane.f32.xlu2 %v738_v25  ;;  %v754_v63 = vunpack.c.l.bf16 %v746_v57 }
 0x32c   : > { %v707_v26 = vpop.xlane.xlu2 %706  ;;  %v756_v52 = vunpack.c.l.bf16 %v748_v46 }
 0x32d   : > { %v717_v27 = vsub.f32 %v645_v10, %v707_v26 }
 0x32f   : > { %v1235_v28 = vpop.eup %1234  ;;  %v721_v29 = vmul.f32 1.442695, %v717_v27  ;;  %v1188_v27 = vld [vmem:[%s1511_s6 + $0x8] sm:$0xff] }
 0x330   : > { %v735_v31 = vsel %vm628_vm6, %v1235_v28, 0.0  ;;  %v747_v41 = vpack.c.bf16 %v1235_v28, %v1235_v28  ;;  %v1187_v28 = vld [vmem:[%s1511_s6] sm:$0xff] }
 0x331   : > { %1236 = vpow2.f32 %v721_v29  ;;  %v600_v30 = vpop.permute.xlu0 %599 }
 0x332   : > { %603 = vst.msk [vmem:[#allocation4 + $0x8] sm:$0xf] %vm561_vm5, %v600_v30  ;;  %v755_v47 = vunpack.c.l.bf16 %v747_v41 }
 0x333   : > { %736 = vadd.xlane.f32.xlu2 %v735_v31 }
 0x337   : > { %v1237_v32 = vpop.eup %1236 }
 0x338   : > { %v729_v33 = vsel %vm628_vm6, %v1237_v32, 0.0  ;;  %v745_v5 = vpack.c.bf16 %v1237_v32, %v1237_v32 }
 0x339   : > { %730 = vadd.xlane.f32.xlu0 %v729_v33  ;;  %v771_v34 = vld [vmem:[#allocation4 + $0x8] sm:$0xf]  ;;  %v1221_v33 = vld [vmem:[%s1512_s7] ss:$0 sm:$0xff] }
 0x33a   : > { %v816_v35 = vsel %vm776_vm7, %v771_v34, 0  ;;  %v753_v10 = vunpack.c.l.bf16 %v745_v5 }
 0x33b   : > { %825 = vmatpush.bf16.msrb.mxu3 %v816_v35 }
 0x343   : > { %584 = vrot.lane.b32.xlu1 %v1390_v36, %s1269_s26 }
 0x34b   : > { %569 = vrot.lane.b32.xlu1 %v1390_v36, %s1270_s27  ;;  %614 = vrot.lane.b32.xlu2 %v1390_v36, %s1271_s28 }
 0x39d   : > { %v734_v39 = vpop.xlane.xlu1 %733 }
 0x39e   : > { %v740_v37 = vpop.xlane.xlu2 %739 }
 0x39f   : > { %1238 = vrcp.f32 %v740_v37 }
 0x3a5   : > { %v1239_v40 = vpop.eup %1238 }
 0x3a6   : > { %v737_v38 = vpop.xlane.xlu2 %736  ;;  %v752_v43 = vpack.c.bf16 %v1239_v40, %v1239_v40 }
 0x3a7   : > { %1240 = vrcp.f32 %v737_v38 }
 0x3a8   : > { %1242 = vrcp.f32 %v734_v39  ;;  %v760_v36 = vunpack.c.l.bf16 %v752_v43 }
 0x3aa   : > { %v764_v55 = vmul.f32 %v760_v36, %v756_v52 }
 0x3ac   : > { %v731_v49 = vpop.xlane.xlu0 %730  ;;  %v768_v62 = vpack.c.bf16 %v764_v55, %v764_v55 }
 0x3ad   : > { %v1241_v42 = vpop.eup %1240  ;;  %1244 = vrcp.f32 %v731_v49 }
 0x3ae   : > { %v751_v44 = vpack.c.bf16 %v1241_v42, %v1241_v42  ;;  %v615_v45 = vpop.permute.xlu2 %614  ;;  %v1243_v50 = vpop.eup %1242 }
 0x3af   : > { %618 = vst.msk [vmem:[#allocation4 + $0xc] sm:$0xf] %vm561_vm5, %v615_v45  ;;  %v750_v53 = vpack.c.bf16 %v1243_v50, %v1243_v50  ;;  %v1190_v45 = vld [vmem:[%s1515_s10 + $0x8] sm:$0xff] }
 0x3b0   : > { %v759_v48 = vunpack.c.l.bf16 %v751_v44 }
 0x3b1   : > { %v758_v60 = vunpack.c.l.bf16 %v750_v53 }
 0x3b2   : > { %v763_v51 = vmul.f32 %v759_v48, %v755_v47 }
 0x3b3   : > { %v1245_v61 = vpop.eup %1244  ;;  %v762_v1 = vmul.f32 %v758_v60, %v754_v63  ;;  %v1194_v60 = vld [vmem:[%s1517_s12 + $0x18] sm:$0xff]  ;;  %v1224_v63 = vld [vmem:[%s1516_s11] ss:$0 sm:$0xff] }
 0x3b4   : > { %v767_v54 = vpack.c.bf16 %v763_v51, %v763_v51  ;;  %v749_v2 = vpack.c.bf16 %v1245_v61, %v1245_v61  ;;  %1046 = vmatpush.bf16.msra.mxu3 %v1194_v60  ;;  %v1193_v61 = vld [vmem:[%s1517_s12 + $0x10] sm:$0xff] }
 0x3b5   : > { %v585_v56 = vpop.permute.xlu1 %584  ;;  %v766_v7 = vpack.c.bf16 %v762_v1, %v762_v1 }
 0x3b6   : > { %588 = vst.msk [vmem:[#allocation4 + $0x4] sm:$0xf] %vm561_vm5, %v585_v56  ;;  %1145 = vmatmul.msk.bf16.vlgmr.msrb.gmra.mxu3 %vm628_vm6, %v767_v54  ;;  %v772_v58 = vld [vmem:[#allocation4 + $0xc] sm:$0xf]  ;;  %v757_v9 = vunpack.c.l.bf16 %v749_v2  ;;  %v1222_v54 = vld [vmem:[%s1513_s8] ss:$0 sm:$0xff] }
 0x3b7   : > { %v835_v59 = vsel %vm776_vm7, %v772_v58, 0  ;;  %v1191_v2 = vld [vmem:[%s1517_s12] sm:$0xff] }
 0x3b8   : > { %844 = vmatpush.bf16.msra.mxu0 %v835_v59  ;;  %v761_v11 = vmul.f32 %v757_v9, %v753_v10  ;;  %1047 = vmatpush.bf16.msra.mxu3 %v1193_v61 }
 0x3ba   : > { %v765_v14 = vpack.c.bf16 %v761_v11, %v761_v11 }
 0x3bb   : > { %1146 = vmatmul.msk.bf16.vlgmr.msra.gmra.mxu0 %vm628_vm6, %v768_v62  ;;  %v1192_v62 = vld [vmem:[%s1517_s12 + $0x8] sm:$0xff] }
 0x3bc   : > { %1048 = vmatpush.bf16.msra.mxu3 %v1192_v62 }
 0x3bd   : > { %v570_v3 = vpop.permute.xlu1 %569  ;;  %v770_v4 = vld [vmem:[#allocation4 + $0x4] sm:$0xf] }
 0x3be   : > { %572 = vst.msk [vmem:[#allocation4] sm:$0xf] %vm561_vm5, %v570_v3  ;;  %v797_v6 = vsel %vm776_vm7, %v770_v4, 0 }
 0x3bf   : > { %806 = vmatpush.bf16.msrb.mxu2 %v797_v6 }
 0x3c0   : > { %1049 = vmatpush.bf16.msra.mxu3 %v1191_v2 }
 0x3c2   : > { %1144 = vmatmul.msk.bf16.vlgmr.msrb.gmra.mxu2 %vm628_vm6, %v766_v7 }
 0x3c3   : > { %973 = vmatpush.bf16.msra.mxu2 %v1190_v45 }
 0x3c5   : > { %v769_v12 = vld [vmem:[#allocation4] sm:$0xf] }
 0x3c6   : > { %v778_v13 = vsel %vm776_vm7, %v769_v12, 0 }
 0x3c7   : > { %787 = vmatpush.bf16.msrb.mxu1 %v778_v13 }
 0x3ca   : > { %1143 = vmatmul.msk.bf16.vlgmr.msrb.gmra.mxu1 %vm628_vm6, %v765_v14 }
 0x3cb   : > { %903 = vmatpush.bf16.msra.mxu1 %v1188_v27 }
 0x3cf   : > { %904 = vmatpush.bf16.msra.mxu1 %v1187_v28 }
 0x438   : > { %v846_v15 = vpop.f32.mrf.mxu0 }
 0x439   : > { %v827_v16 = vpop.f32.mrf.mxu3  ;;  %v866_v25 = vpack.c.bf16 %v846_v15, %v846_v15 }
 0x43a   : > { %v859_v17 = vpack.c.bf16 %v827_v16, %v827_v16 }
 0x43c   : > { %861 = vrot.lane.b32.xlu2 %v859_v17, %s1272_s30 }
 0x440   : > { %v848_v18 = vpop.f32.mrf.mxu0 }
 0x441   : > { %v829_v19 = vpop.f32.mrf.mxu3 }
 0x445   : > { %v808_v20 = vpop.f32.mrf.mxu2 }
 0x446   : > { %v852_v21 = vpack.c.bf16 %v808_v20, %v808_v20 }
 0x447   : > { %v789_v22 = vpop.f32.mrf.mxu1 }
 0x448   : > { %v850_v23 = vpack.c.bf16 %v789_v22, %v789_v22  ;;  %854 = vrot.lane.b32.xlu1 %v852_v21, %s1273_s16  ;;  %v1225_v22 = vld [vmem:[%s1518_s13] ss:$0 sm:$0xff] }
 0x44a   : > { %851 = vst.msk [vmem:[#allocation5] sm:$0xf] %vm561_vm5, %v850_v23 }
 0x44d   : > { %v810_v24 = vpop.f32.mrf.mxu2 }
 0x44f   : > { %v791_v26 = vpop.f32.mrf.mxu1 }
 0x450   : > { %868 = vrot.lane.b32.xlu1 %v866_v25, %s1274_s17 }
 0x496   : > { %v862_v30 = vpop.permute.xlu2 %861 }
 0x4ba   : > { %v855_v29 = vpop.permute.xlu1 %854 }
 0x4bb   : > { %858 = vst.msk [vmem:[#allocation5] sm:$0xf] %vm857_vm8, %v855_v29 }
 0x4bc   : > { %865 = vst.msk [vmem:[#allocation5] sm:$0xf] %vm864_vm9, %v862_v30 }
 0x4c2   : > { %v869_v31 = vpop.permute.xlu1 %868 }
 0x4c3   : > { %872 = vst.msk [vmem:[#allocation5] sm:$0xf] %vm871_vm10, %v869_v31 }
 0x4ca   : > { %v873_v32 = vld [vmem:[#allocation5] sm:$0xf] }
 0x4cb   : > { %1155 = vmatmul.msk.bf16.vlgmr.msra.gmra.mxu1 %vm482_vm0, %v873_v32 }
 0x548   : > { %v906_v34 = vpop.f32.mrf.mxu1 }
 0x549   : > { %v907_v35 = vadd.f32 %v1221_v33, %v906_v34 }
 0x54b   : > { %v1457_v37 = vadd.f32 %v907_v35, %v1364_v0  ;;  %v1189_v0 = vld [vmem:[%s1515_s10] sm:$0xff] }
 0x54c   : > { %974 = vmatpush.bf16.msra.mxu2 %v1189_v0 }
 0x54d   : > { %v911_v38 = vsel %vm482_vm0, %v1457_v37, 0.0 }
 0x54e   : > { %912 = vadd.xlane.f32.xlu2 %v911_v38 }
 0x550   : > { %v908_v39 = vpop.f32.mrf.mxu1 }
 0x5c1   : > { %v913_v40 = vpop.xlane.xlu2 %912 }
 0x5c2   : > { %v914_v41 = vmul.f32 %v913_v40, %v1368_v8 }
 0x5c4   : > { %v915_v42 = vsub.f32 %v1457_v37, %v914_v41 }
 0x5c6   : > { %v916_v43 = vmul.f32 %v915_v42, %v915_v42 }
 0x5c8   : > { %v917_v44 = vsel %vm482_vm0, %v916_v43, 0.0 }
 0x5c9   : > { %918 = vadd.xlane.f32.xlu1 %v917_v44 }
 0x63c   : > { %v919_v46 = vpop.xlane.xlu1 %918 }
 0x63d   : > { %v920_v47 = vmul.f32 %v919_v46, %v1368_v8  ;;  %v1223_v8 = vld [vmem:[%s1514_s9] ss:$0 sm:$0xff] }
 0x63f   : > { %v921_v48 = vadd.f32 1e-05, %v920_v47 }
 0x641   : > { %1246 = vrsqrt.f32 %v921_v48  ;;  %vm928_vm12 = vweird.f32 %v921_v48 }
 0x647   : > { %v1247_v49 = vpop.eup %1246 }
 0x648   : > { %v923_v50 = vmul.f32 %v1247_v49, %v921_v48  ;;  %vm929_vm11 = vweird.f32 %v1247_v49 }
 0x649   : > { %vm930_vm13 = vmor %vm928_vm12, %vm929_vm11 }
 0x64a   : > { %v924_v36 = vmul.f32 %v1247_v49, %v923_v50 }
 0x64c   : > { %v925_v51 = vmul.f32 0.5, %v924_v36 }
 0x64e   : > { %v926_v52 = vsub.f32 1.5, %v925_v51 }
 0x650   : > { %v927_v53 = vmul.f32 %v1247_v49, %v926_v52 }
 0x652   : > { %v931_v55 = vsel %vm930_vm13, %v1247_v49, %v927_v53 }
 0x653   : > { %v932_v56 = vmul.f32 %v931_v55, %v915_v42 }
 0x655   : > { %v937_v57 = vmul.f32 %v1222_v54, %v932_v56 }
 0x657   : > { %v942_v58 = vadd.f32 %v1223_v8, %v937_v57 }
 0x659   : > { %v943_v59 = vpack.c.bf16 %v942_v58, %v942_v58 }
 0x65b   : > { %1164 = vmatmul.msk.bf16.vlgmr.msra.gmra.mxu2 %vm482_vm0, %v943_v59 }
 0x6de   : > { %v976_v1 = vpop.f32.mrf.mxu2 }
 0x6df   : > { %v977_v3 = vadd.f32 %v1224_v63, %v976_v1 }
 0x6e1   : > { %v1165_v4 = vmul.f32 -1.702, %v977_v3 }
 0x6e3   : > { %v982_v5 = vmul.f32 1.442695, %v1165_v4 }
 0x6e5   : > { %1248 = vpow2.f32 %v982_v5 }
 0x6e6   : > { %v978_v6 = vpop.f32.mrf.mxu2 }
 0x6eb   : > { %v1249_v7 = vpop.eup %1248 }
 0x6ec   : > { %v984_v9 = vadd.f32 1.0, %v1249_v7 }
 0x6ee   : > { %1250 = vrcp.f32 %v984_v9  ;;  %v996_v13 = vand.u32 2147483648, %v984_v9  ;;  %v994_v15 = vand.u32 2147483647, %v984_v9  ;;  %vm990_vm15 = vweird.f32 %v984_v9 }
 0x6f0   : > { %v997_v17 = vor.u32 1.1754944e-38, %v996_v13  ;;  %vm995_vm2 = vcmp.eq.f32.partialorder %v994_v15, 8.507059e+37 }
 0x6f4   : > { %v1251_v10 = vpop.eup %1250 }
 0x6f5   : > { %v986_v11 = vmul.f32 %v1251_v10, %v984_v9  ;;  %vm991_vm14 = vweird.f32 %v1251_v10 }
 0x6f6   : > { %vm992_vm1 = vmor %vm990_vm15, %vm991_vm14 }
 0x6f7   : > { %v987_v12 = vsub.f32 1.0, %v986_v11 }
 0x6f9   : > { %v988_v14 = vmul.f32 %v1251_v10, %v987_v12 }
 0x6fb   : > { %v989_v16 = vadd.f32 %v1251_v10, %v988_v14 }
 0x6fd   : > { %v993_v18 = vsel %vm992_vm1, %v1251_v10, %v989_v16 }
 0x6fe   : > { %v998_v19 = vsel %vm995_vm2, %v997_v17, %v993_v18 }
 0x6ff   : > { %v1000_v20 = vmul.f32 %v998_v19, %v977_v3 }
 0x701   : > { %v1001_v21 = vpack.c.bf16 %v1000_v20, %v1000_v20 }
 0x703   : > { %1182 = vmatmul.msk.bf16.vlgmr.msra.gmra.mxu3 %vm1038_vm3, %v1001_v21 }
 0x786   : > { %v1051_v23 = vpop.f32.mrf.mxu3 }
 0x787   : > { %v1052_v24 = vadd.f32 %v1225_v22, %v1051_v23 }
 0x789   : > { %v1055_v25 = vadd.f32 %v1052_v24, %v1457_v37 }
 0x78b   : > { %1056 = vst.msk [vmem:[%s479_s18] sm:$0xff] %vm482_vm0, %v1055_v25 }
 0x78e   : > { %v1053_v26 = vpop.f32.mrf.mxu3 }
 0x78f PF: > { %s24_s29 = sadd.s32 1, %s1258_s29  }
 0x790   : > { %p21_p4 = scmp.ge.s32.totalorder %s24_s29, 4  }
 0x792   :  { %23 = sbr.rel (!%p21_p4) target bundleno = 1 (0x1), region = 118 }

</bundles_post_ra>
